<compile_context>
chip_gen: v6e
topology: v6e:2x2x1
jax: 0.10.0
libtpu: 0.0.40
codegen_flags: <defaults>
</compile_context>

<pallas_src>
import functools

import jax
import jax.numpy as jnp
from jax.experimental import pallas as pl
from jax.experimental.pallas import tpu as pltpu

LN_EPS = 1e-5
# torch nn.GELU() default is exact (erf). Flip to True for the tanh form (EUP) if the
# MLP section is VALU-bound (suggested for v5e).
GELU_APPROXIMATE = False

_KV_TILE = 512                 # KV tile length for the online softmax
_SCORE_TILE_BUDGET = 8 << 20   # target bytes for one live (hc, N, kv_tile) f32 score tile


# ----------------------------- small math helpers -----------------------------

def _layernorm(x, gamma, beta):
    """Two-pass LayerNorm in f32 (matches torch numerics better than E[x^2]-E[x]^2)."""
    mu = jnp.mean(x, axis=-1, keepdims=True)
    xc = x - mu
    var = jnp.mean(xc * xc, axis=-1, keepdims=True)
    return xc * jax.lax.rsqrt(var + LN_EPS) * gamma + beta


def _erf(x):
    """Abramowitz & Stegun 7.1.26 erf (|err| < 1.5e-7). Uses only exp/div/mul so it
    lowers cleanly inside Mosaic (no dependence on a lax.erf lowering rule)."""
    a1, a2, a3, a4, a5 = 0.254829592, -0.284496736, 1.421413741, -1.453152027, 1.061405429
    p = 0.3275911
    ax = jnp.abs(x)
    t = 1.0 / (1.0 + p * ax)
    poly = ((((a5 * t + a4) * t + a3) * t + a2) * t + a1) * t
    y = 1.0 - poly * jnp.exp(-(ax * ax))
    return jnp.where(x >= 0, y, -y)


def _gelu(x):
    if GELU_APPROXIMATE:
        return jax.nn.gelu(x, approximate=True)     # tanh form -> EUP
    return 0.5 * x * (1.0 + _erf(x * 0.7071067811865476))


# ----------------------------- capability probes -----------------------------

@functools.lru_cache(maxsize=None)
def _single_buffer_supported():
    """Whether pl.Buffered(1) (single-buffered constant blocks) works on this jax
    version. Probed with a tiny copy kernel so a failure can never break the real
    kernel — we simply fall back to default double-buffering."""
    try:
        spec = pl.BlockSpec((8, 128), lambda i: (0, 0), pipeline_mode=pl.Buffered(1))

        def _copy(x_ref, o_ref):
            o_ref[...] = x_ref[...]

        out = pl.pallas_call(
            _copy,
            out_shape=jax.ShapeDtypeStruct((8, 128), jnp.float32),
            grid=(1,),
            in_specs=[spec],
            out_specs=pl.BlockSpec((8, 128), lambda i: (0, 0)),
        )(jnp.zeros((8, 128), jnp.float32))
        jax.block_until_ready(out)
        return True
    except Exception:   # construction, lowering or runtime failure -> fall back
        return False


@functools.lru_cache(maxsize=None)
def _vmem_capacity_bytes():
    try:
        return int(pltpu.get_tpu_info().vmem_capacity_bytes)
    except Exception:
        return 64 << 20         # conservative: v7x-sized VMEM


def _rep_spec(shape):
    """Whole-array block replicated across the batch grid. Single-buffered when
    supported: the block index never changes, so double-buffering would waste VMEM."""
    index_map = lambda b: (0,) * len(shape)
    if _single_buffer_supported():
        return pl.BlockSpec(shape, index_map, pipeline_mode=pl.Buffered(1))
    return pl.BlockSpec(shape, index_map)


def _vmem_limit_bytes(x_block_bytes, const_bytes, const_buffers, interm_bytes):
    """Generation-aware VMEM limit: include double-buffered x blocks, (single- or
    double-buffered) constant blocks and the in-kernel f32 intermediates, then clamp
    to a safe fraction of the physical VMEM of this TPU generation."""
    est = int(1.25 * (4 * x_block_bytes + const_buffers * const_bytes + interm_bytes))
    est += 4 << 20                                   # compiler-internal scratch headroom
    cap = _vmem_capacity_bytes()
    if cap <= (64 << 20):                            # v7x: 64 MiB physical -> ~56%
        hard = int(0.56 * cap)
    else:                                            # v5e / v6e: 128 MiB -> use most of it
        hard = min(100 << 20, int(0.78 * cap))
    return int(min(max(est, 16 << 20), hard))


# ----------------------------- kernels -----------------------------

def _block_kernel(heads, dim_head, has_bias, apply_final_ln, kv_tile, head_chunk, *refs):
    """One pre-LN transformer block (attention + MLP) for one batch element.

    packed param rows: [ln1_g, ln1_b, bo, ln2_g, ln2_b, b2, final_g, final_b]
    """
    if has_bias:
        (x_ref, bias_ref, pk_ref, wqkv_ref, wo_ref, w1_ref, b1_ref, w2_ref, o_ref) = refs
    else:
        (x_ref, pk_ref, wqkv_ref, wo_ref, w1_ref, b1_ref, w2_ref, o_ref) = refs
        bias_ref = None

    H, Dh = heads, dim_head

    x = x_ref[0].astype(jnp.float32)                  # (N, D) residual stream, f32
    N, D = x.shape
    pk = pk_ref[...]                                  # (8, D) packed small params
    ln1_g, ln1_b = pk[0:1], pk[1:2]
    bo = pk[2:3]
    ln2_g, ln2_b = pk[3:4], pk[4:5]
    b2 = pk[5:6]

    # ---------------- Attention (pre-LN) ----------------
    xn = _layernorm(x, ln1_g, ln1_b)
    # Fused QKV projection, bf16 MXU matmul with f32 accumulation.
    # The softmax scale is pre-folded into the Q columns of wqkv (init_params).
    qkv = jnp.dot(xn.astype(jnp.bfloat16), wqkv_ref[...],
                  preferred_element_type=jnp.float32)          # (N, 3*H*Dh)
    # Single relayout to head-major bf16; all later head-chunk slices are leading-axis
    # slices (free).  Layout: rows [0,H)=Q heads, [H,2H)=K heads, [2H,3H)=V heads.
    qkv_b = jnp.swapaxes(qkv.astype(jnp.bfloat16).reshape(N, 3 * H, Dh), 0, 1)

    attn_out = jnp.zeros((N, D), jnp.float32)
    for h0 in range(0, H, head_chunk):
        hc = min(head_chunk, H - h0)
        q_b = qkv_b[h0:h0 + hc]                       # (hc, N, Dh) bf16
        k_b = qkv_b[H + h0:H + h0 + hc]
        v_b = qkv_b[2 * H + h0:2 * H + h0 + hc]

        # Flash-style online softmax over KV tiles: only (hc, N, kv_tile) scores live.
        m = jnp.full((hc, N, 1), -jnp.inf, jnp.float32)
        l = jnp.zeros((hc, N, 1), jnp.float32)
        acc = jnp.zeros((hc, N, Dh), jnp.float32)
        for c0 in range(0, N, kv_tile):
            tc = min(kv_tile, N - c0)
            s = jnp.einsum('hnd,hmd->hnm', q_b, k_b[:, c0:c0 + tc],
                           preferred_element_type=jnp.float32)  # (hc, N, tc) f32
            if has_bias:
                s = s + bias_ref[h0:h0 + hc, :, c0:c0 + tc].astype(jnp.float32)
            m_new = jnp.maximum(m, jnp.max(s, axis=-1, keepdims=True))
            alpha = jnp.exp(m - m_new)
            p = jnp.exp(s - m_new)
            l = alpha * l + jnp.sum(p, axis=-1, keepdims=True)
            acc = alpha * acc + jnp.einsum('hnm,hmd->hnd',
                                           p.astype(jnp.bfloat16), v_b[:, c0:c0 + tc],
                                           preferred_element_type=jnp.float32)
            m = m_new

        ctx = acc * pl.reciprocal(l, approx=True)     # (hc, N, Dh), EUP reciprocal

        # Output projection without un-transposing ctx: head-batched matmul against
        # Wo viewed as (hc, Dh, D), then reduce over the head axis.
        wo_c = wo_ref[h0 * Dh:(h0 + hc) * Dh, :].reshape(hc, Dh, D)   # bf16
        proj = jnp.einsum('hnd,hdk->hnk', ctx.astype(jnp.bfloat16), wo_c,
                          preferred_element_type=jnp.float32)          # (hc, N, D)
        attn_out = attn_out + jnp.sum(proj, axis=0)

    x = x + attn_out + bo                             # residual (dropout/drop_path = id)

    # ---------------- FeedForward (pre-LN) ----------------
    xn2 = _layernorm(x, ln2_g, ln2_b)
    h1 = jnp.dot(xn2.astype(jnp.bfloat16), w1_ref[...],
                 preferred_element_type=jnp.float32) + b1_ref[...]
    h1 = _gelu(h1)
    ff = jnp.dot(h1.astype(jnp.bfloat16), w2_ref[...],
                 preferred_element_type=jnp.float32) + b2
    x = x + ff                                        # residual

    # Final LayerNorm fused into the last block (saves one HBM round trip).
    if apply_final_ln:
        x = _layernorm(x, pk[6:7], pk[7:8])

    o_ref[0] = x.astype(o_ref.dtype)


def _final_norm_kernel(x_ref, g_ref, b_ref, o_ref):
    o_ref[0] = _layernorm(x_ref[0].astype(jnp.float32),
                          g_ref[...], b_ref[...]).astype(o_ref.dtype)


# ----------------------------- wrappers -----------------------------

def transformer_block(x, p, heads, dim_head, *, packed=None, attn_bias=None,
                      apply_final_ln=False):
    """x: (B, N, D). attn_bias: optional (H, N, N). Returns (B, N, D)."""
    B, N, D = x.shape
    H = heads
    inner = H * dim_head
    hidden = p["w1"].shape[1]
    has_bias = attn_bias is not None
    if packed is None:
        packed = p["packed"]

    kv_tile = min(N, _KV_TILE)
    head_chunk = max(1, min(H, _SCORE_TILE_BUDGET // max(1, N * kv_tile * 4)))

    kernel = functools.partial(_block_kernel, H, dim_head, has_bias,
                               apply_final_ln, kv_tile, head_chunk)

    in_specs = [pl.BlockSpec((1, N, D), lambda b: (b, 0, 0))]   # per-batch x tile
    args = [x]
    if has_bias:
        in_specs.append(_rep_spec((H, N, N)))
        args.append(jnp.asarray(attn_bias, jnp.bfloat16))       # bf16 bias: half the DMA
    in_specs += [
        _rep_spec((8, D)),              # packed LN / bias params
        _rep_spec((D, 3 * inner)),      # fused Wqkv (bf16, Q columns pre-scaled)
        _rep_spec((inner, D)),          # Wo (bf16)
        _rep_spec((D, hidden)),         # W1 (bf16)
        _rep_spec((1, hidden)),         # b1
        _rep_spec((hidden, D)),         # W2 (bf16)
    ]
    args += [packed, p["wqkv"], p["wo"], p["w1"], p["b1"], p["w2"]]

    x_block_bytes = N * D * x.dtype.itemsize
    const_bytes = sum(int(a.size) * a.dtype.itemsize for a in args[1:])
    const_buffers = 1 if _single_buffer_supported() else 2
    interm_bytes = (6 * N * D * 4                              # x, xn, attn_out, xn2, temps
                    + N * 3 * inner * (4 + 2)                  # qkv f32 + head-major bf16
                    + 3 * head_chunk * N * kv_tile * 4         # s, p, bias tile
                    + 2 * head_chunk * N * (dim_head + 2) * 4  # acc, m, l (+ copies)
                    + head_chunk * N * D * 4                   # per-chunk projection
                    + 2 * N * hidden * 4)                      # h1 f32 + bf16
    vmem_limit = _vmem_limit_bytes(x_block_bytes, const_bytes, const_buffers, interm_bytes)

    return pl.pallas_call(
        kernel,
        out_shape=jax.ShapeDtypeStruct((B, N, D), x.dtype),
        grid=(B,),
        in_specs=in_specs,
        out_specs=pl.BlockSpec((1, N, D), lambda b: (b, 0, 0)),
        compiler_params=pltpu.CompilerParams(
            dimension_semantics=("parallel",),
            vmem_limit_bytes=vmem_limit),
    )(*args)


def final_layernorm(x, gamma, beta):
    # Only used when depth == 0 (otherwise the final LN is fused into the last block).
    B, N, D = x.shape
    return pl.pallas_call(
        _final_norm_kernel,
        out_shape=jax.ShapeDtypeStruct((B, N, D), x.dtype),
        grid=(B,),
        in_specs=[pl.BlockSpec((1, N, D), lambda b: (b, 0, 0)),
                  _rep_spec((1, D)), _rep_spec((1, D))],
        out_specs=pl.BlockSpec((1, N, D), lambda b: (b, 0, 0)),
        compiler_params=pltpu.CompilerParams(dimension_semantics=("parallel",)),
    )(x, gamma.reshape(1, D), beta.reshape(1, D))


def init_params(key, dim, depth, heads, dim_head, mlp_dim):
    """Weights as (in_features, out_features); wqkv = [Wq * scale | Wk | Wv] in bf16."""
    inner = heads * dim_head
    scale = dim_head ** (-0.5)
    project_out = not (heads == 1 and dim_head == dim)
    layers = []
    for layer in range(depth):
        ks = jax.random.split(jax.random.fold_in(key, layer), 8)
        wq = 0.05 * jax.random.normal(ks[0], (dim, inner), jnp.float32)
        wk = 0.05 * jax.random.normal(ks[1], (dim, inner), jnp.float32)
        wv = 0.05 * jax.random.normal(ks[2], (dim, inner), jnp.float32)
        # Softmax scale folded into the Q columns -> no per-token multiply in-kernel.
        wqkv = jnp.concatenate([wq * scale, wk, wv], axis=1).astype(jnp.bfloat16)
        if project_out:
            wo = (0.05 * jax.random.normal(ks[3], (inner, dim), jnp.float32)
                  ).astype(jnp.bfloat16)
            bo = 0.01 * jax.random.normal(ks[4], (dim,), jnp.float32)
        else:       # torch uses nn.Identity() in this configuration
            wo = jnp.eye(inner, dim, dtype=jnp.bfloat16)
            bo = jnp.zeros((dim,), jnp.float32)
        w1 = (0.05 * jax.random.normal(ks[5], (dim, mlp_dim), jnp.float32)
              ).astype(jnp.bfloat16)
        b1 = 0.01 * jax.random.normal(ks[6], (1, mlp_dim), jnp.float32)
        w2 = (0.05 * jax.random.normal(ks[7], (mlp_dim, dim), jnp.float32)
              ).astype(jnp.bfloat16)
        b2 = jnp.zeros((dim,), jnp.float32)
        ones = jnp.ones((dim,), jnp.float32)
        zeros = jnp.zeros((dim,), jnp.float32)
        # packed rows: [ln1_g, ln1_b, bo, ln2_g, ln2_b, b2, final_g, final_b]
        # (final_g/final_b are placeholders, overwritten for the last layer).
        packed = jnp.stack([ones, zeros, bo, ones, zeros, b2, ones, zeros])
        layers.append(dict(packed=packed, wqkv=wqkv, wo=wo, w1=w1, b1=b1, w2=w2))
    kg, kb = jax.random.split(jax.random.fold_in(key, depth + 1))
    final = dict(g=1.0 + 0.1 * jax.random.normal(kg, (dim,), jnp.float32),
                 b=0.05 * jax.random.normal(kb, (dim,), jnp.float32))
    return layers, final


def transformer_forward(x, layers, final, heads, dim_head, attn_bias=None):
    if attn_bias is not None:
        attn_bias = attn_bias.astype(jnp.bfloat16)
    if not layers:
        return final_layernorm(x, final["g"], final["b"])
    depth = len(layers)
    # TODO(synk): fuse a depth grid axis / cross-call weight prefetch to avoid the
    #             per-layer HBM round trip of x.
    for i, p in enumerate(layers):
        is_last = i == depth - 1
        packed = p["packed"]
        if is_last:     # fuse the Transformer's final LayerNorm into the last block
            packed = packed.at[6].set(final["g"]).at[7].set(final["b"])
        x = transformer_block(x, p, heads, dim_head, packed=packed,
                              attn_bias=attn_bias, apply_final_ln=is_last)
    return x


# ----------------------------- pure-JAX reference -----------------------------

def _ref_forward(x, layers, final, heads, dim_head, attn_bias=None):
    """Mirrors the kernel math (bf16 matmul inputs, f32 accumulation, exact softmax)."""
    H, Dh = heads, dim_head
    inner = H * Dh
    x = x.astype(jnp.float32)
    B, N, _ = x.shape
    if attn_bias is not None:
        bias = attn_bias.astype(jnp.bfloat16).astype(jnp.float32)
    for p in layers:
        pk = p["packed"]
        xn = _layernorm(x, pk[0], pk[1])
        qkv = jnp.dot(xn.astype(jnp.bfloat16), p["wqkv"],
                      preferred_element_type=jnp.float32)
        qkv = qkv.reshape(B, N, 3, H, Dh).transpose(2, 0, 3, 1, 4)   # (3, B, H, N, Dh)
        q, k, v = qkv[0], qkv[1], qkv[2]
        dots = jnp.einsum('bhnd,bhmd->bhnm', q.astype(jnp.bfloat16),
                          k.astype(jnp.bfloat16), preferred_element_type=jnp.float32)
        if attn_bias is not None:
            dots = dots + bias[None]
        attn = jax.nn.softmax(dots, axis=-1)
        ctx = jnp.einsum('bhnm,bhmd->bhnd', attn.astype(jnp.bfloat16),
                         v.astype(jnp.bfloat16), preferred_element_type=jnp.float32)
        ctx = ctx.transpose(0, 2, 1, 3).reshape(B, N, inner)
        out = jnp.dot(ctx.astype(jnp.bfloat16), p["wo"],
                      preferred_element_type=jnp.float32) + pk[2]
        x = x + out
        xn2 = _layernorm(x, pk[3], pk[4])
        h1 = jnp.dot(xn2.astype(jnp.bfloat16), p["w1"],
                     preferred_element_type=jnp.float32) + p["b1"][0]
        h1 = _gelu(h1)
        ff = jnp.dot(h1.astype(jnp.bfloat16), p["w2"],
                     preferred_element_type=jnp.float32) + pk[5]
        x = x + ff
    return _layernorm(x, final["g"], final["b"])


if __name__ == "__main__":
    # Small config consistent with the module: dim=32, depth=2, heads=4, dim_head=8,
    # mlp_dim=64; batch B=2, sequence N=8.
    dim, depth, heads, dim_head, mlp_dim = 32, 2, 4, 8, 64
    B, N = 2, 8

    key = jax.random.PRNGKey(0)
    kx, kp, kb = jax.random.split(key, 3)
    x = jax.random.normal(kx, (B, N, dim), jnp.float32)
    attn_bias = 0.1 * jax.random.normal(kb, (heads, N, N), jnp.float32)

    layers, final = init_params(kp, dim, depth, heads, dim_head, mlp_dim)

    # With attn_bias (bias kernel variant).
    out = transformer_forward(x, layers, final, heads, dim_head, attn_bias=attn_bias)
    out = jax.block_until_ready(out)
    assert out.shape == (B, N, dim)
    ref = _ref_forward(x, layers, final, heads, dim_head, attn_bias=attn_bias)
    err = float(jnp.max(jnp.abs(out - ref)))
    assert err < 5e-2, f"bias path max abs err {err}"

    # Without attn_bias (no zero bias tensor is ever materialized or DMA'd).
    out_nb = transformer_forward(x, layers, final, heads, dim_head, attn_bias=None)
    out_nb = jax.block_until_ready(out_nb)
    assert out_nb.shape == (B, N, dim)
    ref_nb = _ref_forward(x, layers, final, heads, dim_head, attn_bias=None)
    err_nb = float(jnp.max(jnp.abs(out_nb - ref_nb)))
    assert err_nb < 5e-2, f"no-bias path max abs err {err_nb}"

    print("KERNEL_OK")
</pallas_src>

<mosaic_0001>
module attributes {stable_mosaic.version = 11 : i64} {
  func.func @_copy(%arg0: i32, %arg1: memref<8x128xf32, #tpu.memory_space<vmem>>, %arg2: memref<8x128xf32, #tpu.memory_space<vmem>>) attributes {dimension_semantics = [#tpu.dimension_semantics<arbitrary>], iteration_bounds = array<i64: 1>, scalar_prefetch = 0 : i64, scratch_operands = 0 : i64, tpu.core_type = #tpu.core_type<tc>, window_params = [{pipeline_mode = #tpu.pipeline_mode<synchronous>, transform_indices = @transform_0, window_bounds = array<i64: 8, 128>}, {pipeline_mode = #tpu.pipeline_mode<synchronous>, transform_indices = @transform_1, window_bounds = array<i64: 8, 128>}]} {
    %c0 = arith.constant 0 : index
    %c0_0 = arith.constant 0 : index
    %0 = vector.load %arg1[%c0, %c0_0] : memref<8x128xf32, #tpu.memory_space<vmem>>, vector<8x128xf32>
    %c0_1 = arith.constant 0 : index
    %c0_2 = arith.constant 0 : index
    %1 = vector.load %arg2[%c0_1, %c0_2] : memref<8x128xf32, #tpu.memory_space<vmem>>, vector<8x128xf32>
    tpu.vector_store %arg2[%c0_1, %c0_2], %0 {strides = array<i32>} : memref<8x128xf32, #tpu.memory_space<vmem>>, vector<8x128xf32>,
    return
  }
  func.func @transform_0(%arg0: i32) -> (i32, i32) {
    %c0_i32 = arith.constant 0 : i32
    %c0_i32_0 = arith.constant 0 : i32
    %c0_i32_1 = arith.constant 0 : i32
    return %c0_i32, %c0_i32_0 : i32, i32
  }
  func.func @transform_1(%arg0: i32) -> (i32, i32) {
    %c0_i32 = arith.constant 0 : i32
    %c0_i32_0 = arith.constant 0 : i32
    %c0_i32_1 = arith.constant 0 : i32
    return %c0_i32, %c0_i32_0 : i32, i32
  }
}

module attributes {stable_mosaic.version = 11 : i64} {
  func.func @_block_kernel(%arg0: i32, %arg1: memref<1x8x32xf32, #tpu.memory_space<vmem>>, %arg2: memref<4x8x8xbf16, #tpu.memory_space<vmem>>, %arg3: memref<8x32xf32, #tpu.memory_space<vmem>>, %arg4: memref<32x96xbf16, #tpu.memory_space<vmem>>, %arg5: memref<32x32xbf16, #tpu.memory_space<vmem>>, %arg6: memref<32x64xbf16, #tpu.memory_space<vmem>>, %arg7: memref<1x64xf32, #tpu.memory_space<vmem>>, %arg8: memref<64x32xbf16, #tpu.memory_space<vmem>>, %arg9: memref<1x8x32xf32, #tpu.memory_space<vmem>>) attributes {dimension_semantics = [#tpu.dimension_semantics<parallel>], iteration_bounds = array<i64: 2>, scalar_prefetch = 0 : i64, scratch_operands = 0 : i64, tpu.core_type = #tpu.core_type<tc>, window_params = [{transform_indices = @transform_0, window_bounds = array<i64: 1, 8, 32>}, {pipeline_mode = #tpu.pipeline_mode<synchronous>, transform_indices = @transform_1, window_bounds = array<i64: 4, 8, 8>}, {pipeline_mode = #tpu.pipeline_mode<synchronous>, transform_indices = @transform_2, window_bounds = array<i64: 8, 32>}, {pipeline_mode = #tpu.pipeline_mode<synchronous>, transform_indices = @transform_3, window_bounds = array<i64: 32, 96>}, {pipeline_mode = #tpu.pipeline_mode<synchronous>, transform_indices = @transform_4, window_bounds = array<i64: 32, 32>}, {pipeline_mode = #tpu.pipeline_mode<synchronous>, transform_indices = @transform_5, window_bounds = array<i64: 32, 64>}, {pipeline_mode = #tpu.pipeline_mode<synchronous>, transform_indices = @transform_6, window_bounds = array<i64: 1, 64>}, {pipeline_mode = #tpu.pipeline_mode<synchronous>, transform_indices = @transform_7, window_bounds = array<i64: 64, 32>}, {transform_indices = @transform_8, window_bounds = array<i64: 1, 8, 32>}]} {
    %c0 = arith.constant 0 : index
    %c0_0 = arith.constant 0 : index
    %c0_1 = arith.constant 0 : index
    %0 = vector.load %arg1[%c0, %c0_0, %c0_1] : memref<1x8x32xf32, #tpu.memory_space<vmem>>, vector<1x8x32xf32>
    %1 = vector.shape_cast %0 : vector<1x8x32xf32> to vector<8x32xf32>
    %c0_2 = arith.constant 0 : index
    %c0_3 = arith.constant 0 : index
    %2 = vector.load %arg3[%c0_2, %c0_3] : memref<8x32xf32, #tpu.memory_space<vmem>>, vector<8x32xf32>
    %3 = vector.extract_strided_slice %2 {offsets = [0, 0], sizes = [1, 32], strides = [1, 1]} : vector<8x32xf32> to vector<1x32xf32>
    %4 = vector.extract_strided_slice %2 {offsets = [1, 0], sizes = [1, 32], strides = [1, 1]} : vector<8x32xf32> to vector<1x32xf32>
    %5 = vector.extract_strided_slice %2 {offsets = [2, 0], sizes = [1, 32], strides = [1, 1]} : vector<8x32xf32> to vector<1x32xf32>
    %6 = vector.extract_strided_slice %2 {offsets = [3, 0], sizes = [1, 32], strides = [1, 1]} : vector<8x32xf32> to vector<1x32xf32>
    %7 = vector.extract_strided_slice %2 {offsets = [4, 0], sizes = [1, 32], strides = [1, 1]} : vector<8x32xf32> to vector<1x32xf32>
    %8 = vector.extract_strided_slice %2 {offsets = [5, 0], sizes = [1, 32], strides = [1, 1]} : vector<8x32xf32> to vector<1x32xf32>
    %cst = arith.constant dense<0.000000e+00> : vector<8xf32>
    %9 = vector.multi_reduction <add>, %1, %cst [1] : vector<8x32xf32> to vector<8xf32>
    %10 = vector.shape_cast %9 : vector<8xf32> to vector<8x1xf32>
    %cst_4 = arith.constant 3.200000e+01 : f32
    %11 = vector.broadcast %cst_4 : f32 to vector<8x1xf32>
    %12 = arith.divf %10, %11 : vector<8x1xf32>
    %13 = vector.broadcast %12 : vector<8x1xf32> to vector<8x32xf32>
    %14 = arith.subf %1, %13 : vector<8x32xf32>
    %15 = arith.mulf %14, %14 : vector<8x32xf32>
    %cst_5 = arith.constant dense<0.000000e+00> : vector<8xf32>
    %16 = vector.multi_reduction <add>, %15, %cst_5 [1] : vector<8x32xf32> to vector<8xf32>
    %17 = vector.shape_cast %16 : vector<8xf32> to vector<8x1xf32>
    %cst_6 = arith.constant 3.200000e+01 : f32
    %18 = vector.broadcast %cst_6 : f32 to vector<8x1xf32>
    %19 = arith.divf %17, %18 : vector<8x1xf32>
    %cst_7 = arith.constant 9.99999974E-6 : f32
    %20 = vector.broadcast %cst_7 : f32 to vector<8x1xf32>
    %21 = arith.addf %19, %20 : vector<8x1xf32>
    %22 = math.rsqrt %21 : vector<8x1xf32>
    %23 = vector.broadcast %22 : vector<8x1xf32> to vector<8x32xf32>
    %24 = arith.mulf %14, %23 : vector<8x32xf32>
    %25 = vector.broadcast %3 : vector<1x32xf32> to vector<8x32xf32>
    %26 = arith.mulf %24, %25 : vector<8x32xf32>
    %27 = vector.broadcast %4 : vector<1x32xf32> to vector<8x32xf32>
    %28 = arith.addf %26, %27 : vector<8x32xf32>
    %29 = arith.truncf %28 : vector<8x32xf32> to vector<8x32xbf16>
    %c0_8 = arith.constant 0 : index
    %c0_9 = arith.constant 0 : index
    %30 = vector.load %arg4[%c0_8, %c0_9] : memref<32x96xbf16, #tpu.memory_space<vmem>>, vector<32x96xbf16>
    %cst_10 = arith.constant dense<0.000000e+00> : vector<8x96xf32>
    %31 = tpu.matmul %29, %30, %cst_10 {dimension_numbers = #tpu.dot_dimension_numbers<[1], [0], [0], [1], [0, 0, 1, 1], [], []>} : vector<8x32xbf16>, vector<32x96xbf16>, vector<8x96xf32> -> vector<8x96xf32>
    %32 = arith.truncf %31 : vector<8x96xf32> to vector<8x96xbf16>
    %33 = vector.shape_cast %32 : vector<8x96xbf16> to vector<8x12x8xbf16>
    %34 = tpu.transpose %33, [1, 0, 2] : vector<8x12x8xbf16> -> vector<12x8x8xbf16>
    %cst_11 = arith.constant 0.000000e+00 : f32
    %35 = vector.broadcast %cst_11 : f32 to vector<8x32xf32>
    %36 = vector.extract_strided_slice %34 {offsets = [0, 0, 0], sizes = [4, 8, 8], strides = [1, 1, 1]} : vector<12x8x8xbf16> to vector<4x8x8xbf16>
    %37 = vector.extract_strided_slice %34 {offsets = [4, 0, 0], sizes = [4, 8, 8], strides = [1, 1, 1]} : vector<12x8x8xbf16> to vector<4x8x8xbf16>
    %38 = vector.extract_strided_slice %34 {offsets = [8, 0, 0], sizes = [4, 8, 8], strides = [1, 1, 1]} : vector<12x8x8xbf16> to vector<4x8x8xbf16>
    %cst_12 = arith.constant 0xFF800000 : f32
    %39 = vector.broadcast %cst_12 : f32 to vector<4x8x1xf32>
    %cst_13 = arith.constant 0.000000e+00 : f32
    %40 = vector.broadcast %cst_13 : f32 to vector<4x8x1xf32>
    %cst_14 = arith.constant 0.000000e+00 : f32
    %41 = vector.broadcast %cst_14 : f32 to vector<4x8x8xf32>
    "tpu.trace_start"() <{level = 10 : i32, message = "hnd,hmd->hnm"}> : () -> ()
    %cst_15 = arith.constant dense<0.000000e+00> : vector<4x8x8xf32>
    %42 = tpu.matmul %36, %37, %cst_15 {dimension_numbers = #tpu.dot_dimension_numbers<[2], [2], [1], [1], [0, 0, 0, 1, 1, 1], [0], [0]>} : vector<4x8x8xbf16>, vector<4x8x8xbf16>, vector<4x8x8xf32> -> vector<4x8x8xf32>
    "tpu.trace_stop"() : () -> ()
    %c0_16 = arith.constant 0 : index
    %c0_17 = arith.constant 0 : index
    %c0_18 = arith.constant 0 : index
    %43 = vector.load %arg2[%c0_16, %c0_17, %c0_18] : memref<4x8x8xbf16, #tpu.memory_space<vmem>>, vector<4x8x8xbf16>
    %44 = arith.extf %43 : vector<4x8x8xbf16> to vector<4x8x8xf32>
    %45 = arith.addf %42, %44 : vector<4x8x8xf32>
    %cst_19 = arith.constant dense<0xFF800000> : vector<4x8xf32>
    %46 = vector.multi_reduction <maximumf>, %45, %cst_19 [2] : vector<4x8x8xf32> to vector<4x8xf32>
    %47 = vector.shape_cast %46 : vector<4x8xf32> to vector<4x8x1xf32>
    %48 = arith.maximumf %39, %47 : vector<4x8x1xf32>
    %49 = arith.subf %39, %48 : vector<4x8x1xf32>
    %50 = math.exp %49 : vector<4x8x1xf32>
    %51 = vector.broadcast %48 : vector<4x8x1xf32> to vector<4x8x8xf32>
    %52 = arith.subf %45, %51 : vector<4x8x8xf32>
    %53 = math.exp %52 : vector<4x8x8xf32>
    %54 = arith.mulf %50, %40 : vector<4x8x1xf32>
    %cst_20 = arith.constant dense<0.000000e+00> : vector<4x8xf32>
    %55 = vector.multi_reduction <add>, %53, %cst_20 [2] : vector<4x8x8xf32> to vector<4x8xf32>
    %56 = vector.shape_cast %55 : vector<4x8xf32> to vector<4x8x1xf32>
    %57 = arith.addf %54, %56 : vector<4x8x1xf32>
    %58 = vector.broadcast %50 : vector<4x8x1xf32> to vector<4x8x8xf32>
    %59 = arith.mulf %58, %41 : vector<4x8x8xf32>
    %60 = arith.truncf %53 : vector<4x8x8xf32> to vector<4x8x8xbf16>
    "tpu.trace_start"() <{level = 10 : i32, message = "hnm,hmd->hnd"}> : () -> ()
    %cst_21 = arith.constant dense<0.000000e+00> : vector<4x8x8xf32>
    %61 = tpu.matmul %60, %38, %cst_21 {dimension_numbers = #tpu.dot_dimension_numbers<[2], [1], [1], [2], [0, 0, 0, 1, 1, 2], [0], [0]>} : vector<4x8x8xbf16>, vector<4x8x8xbf16>, vector<4x8x8xf32> -> vector<4x8x8xf32>
    "tpu.trace_stop"() : () -> ()
    %62 = arith.addf %59, %61 : vector<4x8x8xf32>
    %63 = tpu.reciprocal %57 {approx = true} : vector<4x8x1xf32> -> vector<4x8x1xf32>
    %64 = vector.broadcast %63 : vector<4x8x1xf32> to vector<4x8x8xf32>
    %65 = arith.mulf %62, %64 : vector<4x8x8xf32>
    %c0_22 = arith.constant 0 : index
    %c0_23 = arith.constant 0 : index
    %66 = vector.load %arg5[%c0_22, %c0_23] : memref<32x32xbf16, #tpu.memory_space<vmem>>, vector<32x32xbf16>
    %67 = vector.shape_cast %66 : vector<32x32xbf16> to vector<4x8x32xbf16>
    %68 = arith.truncf %65 : vector<4x8x8xf32> to vector<4x8x8xbf16>
    "tpu.trace_start"() <{level = 10 : i32, message = "hnd,hdk->hnk"}> : () -> ()
    %cst_24 = arith.constant dense<0.000000e+00> : vector<4x8x32xf32>
    %69 = tpu.matmul %68, %67, %cst_24 {dimension_numbers = #tpu.dot_dimension_numbers<[2], [1], [1], [2], [0, 0, 0, 1, 1, 2], [0], [0]>} : vector<4x8x8xbf16>, vector<4x8x32xbf16>, vector<4x8x32xf32> -> vector<4x8x32xf32>
    "tpu.trace_stop"() : () -> ()
    %cst_25 = arith.constant dense<0.000000e+00> : vector<8x32xf32>
    %70 = vector.multi_reduction <add>, %69, %cst_25 [0] : vector<4x8x32xf32> to vector<8x32xf32>
    %71 = arith.addf %35, %70 : vector<8x32xf32>
    %72 = arith.addf %1, %71 : vector<8x32xf32>
    %73 = vector.broadcast %5 : vector<1x32xf32> to vector<8x32xf32>
    %74 = arith.addf %72, %73 : vector<8x32xf32>
    %cst_26 = arith.constant dense<0.000000e+00> : vector<8xf32>
    %75 = vector.multi_reduction <add>, %74, %cst_26 [1] : vector<8x32xf32> to vector<8xf32>
    %76 = vector.shape_cast %75 : vector<8xf32> to vector<8x1xf32>
    %cst_27 = arith.constant 3.200000e+01 : f32
    %77 = vector.broadcast %cst_27 : f32 to vector<8x1xf32>
    %78 = arith.divf %76, %77 : vector<8x1xf32>
    %79 = vector.broadcast %78 : vector<8x1xf32> to vector<8x32xf32>
    %80 = arith.subf %74, %79 : vector<8x32xf32>
    %81 = arith.mulf %80, %80 : vector<8x32xf32>
    %cst_28 = arith.constant dense<0.000000e+00> : vector<8xf32>
    %82 = vector.multi_reduction <add>, %81, %cst_28 [1] : vector<8x32xf32> to vector<8xf32>
    %83 = vector.shape_cast %82 : vector<8xf32> to vector<8x1xf32>
    %cst_29 = arith.constant 3.200000e+01 : f32
    %84 = vector.broadcast %cst_29 : f32 to vector<8x1xf32>
    %85 = arith.divf %83, %84 : vector<8x1xf32>
    %cst_30 = arith.constant 9.99999974E-6 : f32
    %86 = vector.broadcast %cst_30 : f32 to vector<8x1xf32>
    %87 = arith.addf %85, %86 : vector<8x1xf32>
    %88 = math.rsqrt %87 : vector<8x1xf32>
    %89 = vector.broadcast %88 : vector<8x1xf32> to vector<8x32xf32>
    %90 = arith.mulf %80, %89 : vector<8x32xf32>
    %91 = vector.broadcast %6 : vector<1x32xf32> to vector<8x32xf32>
    %92 = arith.mulf %90, %91 : vector<8x32xf32>
    %93 = vector.broadcast %7 : vector<1x32xf32> to vector<8x32xf32>
    %94 = arith.addf %92, %93 : vector<8x32xf32>
    %95 = arith.truncf %94 : vector<8x32xf32> to vector<8x32xbf16>
    %c0_31 = arith.constant 0 : index
    %c0_32 = arith.constant 0 : index
    %96 = vector.load %arg6[%c0_31, %c0_32] : memref<32x64xbf16, #tpu.memory_space<vmem>>, vector<32x64xbf16>
    %cst_33 = arith.constant dense<0.000000e+00> : vector<8x64xf32>
    %97 = tpu.matmul %95, %96, %cst_33 {dimension_numbers = #tpu.dot_dimension_numbers<[1], [0], [0], [1], [0, 0, 1, 1], [], []>} : vector<8x32xbf16>, vector<32x64xbf16>, vector<8x64xf32> -> vector<8x64xf32>
    %c0_34 = arith.constant 0 : index
    %c0_35 = arith.constant 0 : index
    %98 = vector.load %arg7[%c0_34, %c0_35] : memref<1x64xf32, #tpu.memory_space<vmem>>, vector<1x64xf32>
    %99 = vector.broadcast %98 : vector<1x64xf32> to vector<8x64xf32>
    %100 = arith.addf %97, %99 : vector<8x64xf32>
    %cst_36 = arith.constant 5.000000e-01 : f32
    %101 = vector.broadcast %cst_36 : f32 to vector<8x64xf32>
    %102 = arith.mulf %101, %100 : vector<8x64xf32>
    %cst_37 = arith.constant 0.707106769 : f32
    %103 = vector.broadcast %cst_37 : f32 to vector<8x64xf32>
    %104 = arith.mulf %100, %103 : vector<8x64xf32>
    %105 = math.absf %104 : vector<8x64xf32>
    %cst_38 = arith.constant 0.327591091 : f32
    %106 = vector.broadcast %cst_38 : f32 to vector<8x64xf32>
    %107 = arith.mulf %106, %105 : vector<8x64xf32>
    %cst_39 = arith.constant 1.000000e+00 : f32
    %108 = vector.broadcast %cst_39 : f32 to vector<8x64xf32>
    %109 = arith.addf %108, %107 : vector<8x64xf32>
    %cst_40 = arith.constant 1.000000e+00 : f32
    %110 = vector.broadcast %cst_40 : f32 to vector<8x64xf32>
    %111 = arith.divf %110, %109 : vector<8x64xf32>
    %cst_41 = arith.constant 1.06140542 : f32
    %112 = vector.broadcast %cst_41 : f32 to vector<8x64xf32>
    %113 = arith.mulf %112, %111 : vector<8x64xf32>
    %cst_42 = arith.constant -1.45315206 : f32
    %114 = vector.broadcast %cst_42 : f32 to vector<8x64xf32>
    %115 = arith.addf %113, %114 : vector<8x64xf32>
    %116 = arith.mulf %115, %111 : vector<8x64xf32>
    %cst_43 = arith.constant 1.42141378 : f32
    %117 = vector.broadcast %cst_43 : f32 to vector<8x64xf32>
    %118 = arith.addf %116, %117 : vector<8x64xf32>
    %119 = arith.mulf %118, %111 : vector<8x64xf32>
    %cst_44 = arith.constant -0.284496725 : f32
    %120 = vector.broadcast %cst_44 : f32 to vector<8x64xf32>
    %121 = arith.addf %119, %120 : vector<8x64xf32>
    %122 = arith.mulf %121, %111 : vector<8x64xf32>
    %cst_45 = arith.constant 0.254829586 : f32
    %123 = vector.broadcast %cst_45 : f32 to vector<8x64xf32>
    %124 = arith.addf %122, %123 : vector<8x64xf32>
    %125 = arith.mulf %124, %111 : vector<8x64xf32>
    %126 = arith.mulf %105, %105 : vector<8x64xf32>
    %cst_46 = arith.constant 0.000000e+00 : f32
    %127 = vector.broadcast %cst_46 : f32 to vector<8x64xf32>
    %128 = arith.subf %127, %126 : vector<8x64xf32>
    %129 = math.exp %128 : vector<8x64xf32>
    %130 = arith.mulf %125, %129 : vector<8x64xf32>
    %cst_47 = arith.constant 1.000000e+00 : f32
    %131 = vector.broadcast %cst_47 : f32 to vector<8x64xf32>
    %132 = arith.subf %131, %130 : vector<8x64xf32>
    %cst_48 = arith.constant 0.000000e+00 : f32
    %133 = vector.broadcast %cst_48 : f32 to vector<8x64xf32>
    %134 = arith.cmpf oge, %104, %133 : vector<8x64xf32>
    %cst_49 = arith.constant 0.000000e+00 : f32
    %135 = vector.broadcast %cst_49 : f32 to vector<8x64xf32>
    %136 = arith.subf %135, %132 : vector<8x64xf32>
    %137 = arith.select %134, %132, %136 : vector<8x64xi1>, vector<8x64xf32>
    %cst_50 = arith.constant 1.000000e+00 : f32
    %138 = vector.broadcast %cst_50 : f32 to vector<8x64xf32>
    %139 = arith.addf %138, %137 : vector<8x64xf32>
    %140 = arith.mulf %102, %139 : vector<8x64xf32>
    %141 = arith.truncf %140 : vector<8x64xf32> to vector<8x64xbf16>
    %c0_51 = arith.constant 0 : index
    %c0_52 = arith.constant 0 : index
    %142 = vector.load %arg8[%c0_51, %c0_52] : memref<64x32xbf16, #tpu.memory_space<vmem>>, vector<64x32xbf16>
    %cst_53 = arith.constant dense<0.000000e+00> : vector<8x32xf32>
    %143 = tpu.matmul %141, %142, %cst_53 {dimension_numbers = #tpu.dot_dimension_numbers<[1], [0], [0], [1], [0, 0, 1, 1], [], []>} : vector<8x64xbf16>, vector<64x32xbf16>, vector<8x32xf32> -> vector<8x32xf32>
    %144 = vector.broadcast %8 : vector<1x32xf32> to vector<8x32xf32>
    %145 = arith.addf %143, %144 : vector<8x32xf32>
    %146 = arith.addf %74, %145 : vector<8x32xf32>
    %c0_54 = arith.constant 0 : index
    %c0_55 = arith.constant 0 : index
    %c0_56 = arith.constant 0 : index
    %147 = vector.load %arg9[%c0_54, %c0_55, %c0_56] : memref<1x8x32xf32, #tpu.memory_space<vmem>>, vector<1x8x32xf32>
    %148 = vector.shape_cast %147 : vector<1x8x32xf32> to vector<8x32xf32>
    %149 = vector.shape_cast %146 : vector<8x32xf32> to vector<1x8x32xf32>
    tpu.vector_store %arg9[%c0_54, %c0_55, %c0_56], %149 {strides = array<i32>} : memref<1x8x32xf32, #tpu.memory_space<vmem>>, vector<1x8x32xf32>,
    return
  }
  func.func @transform_0(%arg0: i32) -> (i32, i32, i32) {
    %c0_i32 = arith.constant 0 : i32
    %c0_i32_0 = arith.constant 0 : i32
    %c0_i32_1 = arith.constant 0 : i32
    return %arg0, %c0_i32, %c0_i32_0 : i32, i32, i32
  }
  func.func @transform_1(%arg0: i32) -> (i32, i32, i32) {
    %c0_i32 = arith.constant 0 : i32
    %c0_i32_0 = arith.constant 0 : i32
    %c0_i32_1 = arith.constant 0 : i32
    %c0_i32_2 = arith.constant 0 : i32
    return %c0_i32, %c0_i32_0, %c0_i32_1 : i32, i32, i32
  }
  func.func @transform_2(%arg0: i32) -> (i32, i32) {
    %c0_i32 = arith.constant 0 : i32
    %c0_i32_0 = arith.constant 0 : i32
    %c0_i32_1 = arith.constant 0 : i32
    return %c0_i32, %c0_i32_0 : i32, i32
  }
  func.func @transform_3(%arg0: i32) -> (i32, i32) {
    %c0_i32 = arith.constant 0 : i32
    %c0_i32_0 = arith.constant 0 : i32
    %c0_i32_1 = arith.constant 0 : i32
    return %c0_i32, %c0_i32_0 : i32, i32
  }
  func.func @transform_4(%arg0: i32) -> (i32, i32) {
    %c0_i32 = arith.constant 0 : i32
    %c0_i32_0 = arith.constant 0 : i32
    %c0_i32_1 = arith.constant 0 : i32
    return %c0_i32, %c0_i32_0 : i32, i32
  }
  func.func @transform_5(%arg0: i32) -> (i32, i32) {
    %c0_i32 = arith.constant 0 : i32
    %c0_i32_0 = arith.constant 0 : i32
    %c0_i32_1 = arith.constant 0 : i32
    return %c0_i32, %c0_i32_0 : i32, i32
  }
  func.func @transform_6(%arg0: i32) -> (i32, i32) {
    %c0_i32 = arith.constant 0 : i32
    %c0_i32_0 = arith.constant 0 : i32
    %c0_i32_1 = arith.constant 0 : i32
    return %c0_i32, %c0_i32_0 : i32, i32
  }
  func.func @transform_7(%arg0: i32) -> (i32, i32) {
    %c0_i32 = arith.constant 0 : i32
    %c0_i32_0 = arith.constant 0 : i32
    %c0_i32_1 = arith.constant 0 : i32
    return %c0_i32, %c0_i32_0 : i32, i32
  }
  func.func @transform_8(%arg0: i32) -> (i32, i32, i32) {
    %c0_i32 = arith.constant 0 : i32
    %c0_i32_0 = arith.constant 0 : i32
    %c0_i32_1 = arith.constant 0 : i32
    return %arg0, %c0_i32, %c0_i32_0 : i32, i32, i32
  }
}

</mosaic_0001>

<bundles_post_ra>
// kernel: tpu_custom_call.1
= control target key start
LH: loop header
LB: loop body
LE: loop exit
PB: predicated region body
PF: predicated region fallthrough
CT: control target
= control target key end

     0   :  { %6 = vsyncpa [#allocation3], 0  ;;  %s102_s0 = inlined_call_operand.hbm [shape: f32[8,128], index: 0, kind: input, shape index: {}]   ;;  %s103_s1 = inlined_call_operand.hbm [shape: f32[8,128], index: 1, kind: output, shape index: {}]  }
   0x1   :  { %7 = vsyncpa [#allocation4], 0  ;;  %s84_s6 = smov [#allocation2]  }
   0x2   :  { %s14_s7 = sshll.u32 %s84_s6, 4  ;;  %s15_s7 = int_to_ptr.vmem [resolvable:$true] %s14_s7 }
   0x3   :  { %s48_s8 = scalar_lea.vmem %s15_s7, 128  ;;  %p53_p1 = scmp.lt.s32.totalorder %s15_s7, %s15_s7 }
   0x4   :  { %p49_p0 = scmp.ne.s32.totalorder %s15_s7, %s48_s8  ;;  %p54_p2 = scmp.lt.s32.totalorder %s48_s8, %s48_s8 }
   0x6   :  { %p55_p3 = por %p54_p2, %p53_p1 }
   0x8   :  { %p56_p4 = pnand %p55_p3, %p49_p0 }
   0xa   :  { %59 = shalt.err (!%p56_p4)
}
   0xb   :  { %17 = dma.hbm_to_vmem [thread:$0]  %s102_s0, 128, %s15_s7, [#allocation3]  }
   0xc   :  { %80 = dma.done.wait [#allocation3], 128  }
   0xd   :  { %81 = vsyncadd [#allocation3], 4294967168  ;;  %s85_s11 = smov [#allocation5]   ;;  %v21_v0 = vld [vmem:[#allocation2] sm:$0xff] }
   0xe   :  { %s29_s12 = sshll.u32 %s85_s11, 4  ;;  %22 = vst [vmem:[#allocation5] sm:$0xff] %v21_v0  ;;  %s30_s12 = int_to_ptr.vmem [resolvable:$true] %s29_s12 }
   0xf   :  { %s60_s13 = scalar_lea.vmem %s30_s12, 128  ;;  %p65_p6 = scmp.lt.s32.totalorder %s30_s12, %s30_s12 }
  0x10   :  { %p61_p5 = scmp.ne.s32.totalorder %s30_s12, %s60_s13  ;;  %p66_p7 = scmp.lt.s32.totalorder %s60_s13, %s60_s13 }
  0x12   :  { %p67_p8 = por %p66_p7, %p65_p6 }
  0x14   :  { %p68_p9 = pnand %p67_p8, %p61_p5 }
  0x16   :  { %71 = shalt.err (!%p68_p9)
}
  0x17   :  { %32 = dma.vmem_to_hbm [thread:$0]  %s30_s12, 128, %s103_s1, [#allocation4]  }
  0x18   :  { %82 = dma.done.wait [#allocation4], 128  }
  0x19   :  { %83 = vsyncadd [#allocation4], 4294967168 }
  0x1a   :  { %36 = vsyncpa [#allocation3], 1 }
  0x1b   :  { %37 = vsyncpa [#allocation4], 1 }

// kernel: tpu_custom_call.1
= control target key start
LH: loop header
LB: loop body
LE: loop exit
PB: predicated region body
PF: predicated region fallthrough
CT: control target
= control target key end

     0   :  { %13 = vsyncpa [#allocation3], 0  ;;  %s2615_s0 = inlined_call_operand.vmem [shape: f32[2,8,32], index: 0, kind: input, shape index: {}]   ;;  %s2616_s1 = inlined_call_operand.vmem [shape: bf16[4,8,8], index: 1, kind: input, shape index: {}]   ;;  %s2617_s2 = inlined_call_operand.hbm [shape: f32[8,32], index: 2, kind: input, shape index: {}]   ;;  %s2618_s3 = inlined_call_operand.vmem [shape: bf16[32,96], index: 3, kind: input, shape index: {}]   ;;  %s2619_s4 = inlined_call_operand.hbm [shape: bf16[32,32], index: 4, kind: input, shape index: {}]   ;;  %s2620_s5 = inlined_call_operand.hbm [shape: bf16[32,64], index: 5, kind: input, shape index: {}]   ;;  %s2621_s6 = inlined_call_operand.vmem [shape: f32[1,64], index: 6, kind: input, shape index: {}]   ;;  %s2622_s7 = inlined_call_operand.vmem [shape: bf16[64,32], index: 7, kind: input, shape index: {}]   ;;  %s2623_s8 = inlined_call_operand.hbm [shape: f32[2,8,32], index: 8, kind: output, shape index: {}]  }
   0x1   :  { %14 = vsyncpa [#allocation6], 0 }
   0x2   :  { %15 = vsyncpa [#allocation4], 0 }
   0x3   :  { %17 = vsyncpa [#allocation4 + $0x1], 0  ;;  %s2271_s27 = smov 0   ;;  %s2273_s28 = smov 0  }
   0x4   :  { %s2275_s29 = smov 0   ;;  %s2277_s30 = smov 0  }
   0x5 LB: > { %s2292_s9 = sadd.s32 4294967295, %s2202_s30   ;;  %s1744_s10 = sadd.s32 4294967294, %s2202_s30   ;;  %s2202_s30 = sphi %s2277_s30, %s2639_s30   ;;  %s2198_s29 = sphi %s2275_s29, %s2638_s29   ;;  %s2194_s28 = sphi %s2273_s28, %s2637_s28   ;;  %s2190_s27 = sphi %s2271_s27, %s2636_s27  }
   0x6   : > { %s2296_s11 = sadd.s32 1, %s2202_s30   ;;  %s203_s12 = sadd.s32 1, %s2198_s29 }
   0x7   : > { %s200_s13 = ssub.s32 %s2202_s30, %s2296_s11  ;;  %p213_p0 = scmp.ne.s32.totalorder %s2198_s29, %s2194_s28 }
   0x8   : > { %p201_p1 = scmp.eq.s32.totalorder %s200_s13, 0  ;;  %p214_p2 = scmp.eq.s32.totalorder %s2292_s9, 1 }
   0x9   : > { %p219_p3 = scmp.ne.s32.totalorder %s2194_s28, %s2190_s27  ;;  %p220_p4 = scmp.eq.s32.totalorder %s1744_s10, 1 }
   0xa   : > { %s2307_s14 = scalar_select %p201_p1, %s2198_s29, %s203_s12  }
   0xb   : > { %p2309_p5 = por %p214_p2, %p213_p0  ;;  %p2313_p6 = por %p220_p4, %p219_p3 }
   0xc   : > { %p1745_p7 = scmp.ge.s32.totalorder %s2202_s30, 1  ;;  %p227_p8 = scmp.lt.s32.totalorder %s2202_s30, 3 }
   0xd   : > { %s2626_s15 = scalar_select %p2309_p5, 1, 0 }
   0xe   : > { %s2627_s16 = scalar_select %p2313_p6, 1, 0 }
   0xf   : > { %p2624_p9 = scmp.eq.s32.totalorder %s2292_s9, 0  ;;  %p2320_p10 = pnand %p1745_p7, %p227_p8 }
  0x10   : > { %s2204_s18 = smov [#allocation5]   ;;  %s2205_s21 = smov [#allocation2]  }
  0x11   : > { %s256_s19 = sshll.u32 %s2204_s18, 4  ;;  %p1942_p11 = pneg %p2320_p10  ;;  %s257_s19 = int_to_ptr.vmem [resolvable:$true] %s256_s19 }
  0x12   : > { %s243_s22 = sshll.u32 %s2205_s21, 4  ;;  %s2206_s23 = smov [#allocation7]   ;;  %s244_s22 = int_to_ptr.vmem [resolvable:$true] %s243_s22 }
  0x13   : > { %p2328_p12 = pnand %p2624_p9, %p1942_p11  ;;  %s269_s24 = sshll.u32 %s2206_s23, 4  ;;  %s270_s24 = int_to_ptr.vmem [resolvable:$true] %s269_s24 }
  0x14   : > { %s2067_s25 = scalar_lea.vmem %s257_s19, 256  ;;  %p2075_p3 = scmp.lt.s32.totalorder %s257_s19, %s257_s19 }
  0x15   : > { %p2058_p13 = pneg %p2328_p12  ;;  %p2068_p0 = scmp.ne.s32.totalorder %s257_s19, %s2067_s25 }
  0x16   : > { %p2076_p4 = scmp.lt.s32.totalorder %s2067_s25, %s2067_s25 }
  0x17   : > { %p2070_p1 = pnand %p2068_p0, %p2058_p13 }
  0x18   : > { %p2077_p7 = por %p2076_p4, %p2075_p3 }
  0x19   : > { %p2071_p2 = pneg %p2070_p1 }
  0x1b   : > { %p2078_p8 = pnand %p2077_p7, %p2071_p2 }
  0x1d   : > { %2081 = shalt.err (!%p2078_p8)
}
  0x1e   : > { %s2207_s26 = smov 64   ;;  %s2208_s10 = smov 4  }
  0x1f   : > { %1948 = dma.hbm_to_vmem [thread:$0]  (!%p2328_p12), %s2619_s4, 256, %s257_s19, [#allocation6], %s2207_s26, %s2207_s26, %s2208_s10  }
  0x20   : > { %s2093_s18 = scalar_lea.vmem %s244_s22, 128  ;;  %p2101_p9 = scmp.lt.s32.totalorder %s244_s22, %s244_s22 }
  0x21   : > { %p2094_p11 = scmp.ne.s32.totalorder %s244_s22, %s2093_s18  ;;  %p2102_p6 = scmp.lt.s32.totalorder %s2093_s18, %s2093_s18 }
  0x23   : > { %p2096_p0 = pnand %p2094_p11, %p2058_p13  ;;  %p2103_p3 = por %p2102_p6, %p2101_p9 }
  0x25   : > { %p2097_p1 = pneg %p2096_p0 }
  0x27   : > { %p2104_p2 = pnand %p2103_p3, %p2097_p1 }
  0x29   : > { %2107 = shalt.err (!%p2104_p2)
}
  0x2a   : > { %1945 = dma.hbm_to_vmem [thread:$0]  (!%p2328_p12), %s2617_s2, 128, %s244_s22, [#allocation3]  }
  0x2b   : > { %s2119_s19 = scalar_lea.vmem %s270_s24, 256  ;;  %p2127_p11 = scmp.lt.s32.totalorder %s270_s24, %s270_s24 }
  0x2c   : > { %p2120_p4 = scmp.ne.s32.totalorder %s270_s24, %s2119_s19  ;;  %p2128_p0 = scmp.lt.s32.totalorder %s2119_s19, %s2119_s19 }
  0x2e   : > { %p2122_p7 = pnand %p2120_p4, %p2058_p13  ;;  %p2129_p5 = por %p2128_p0, %p2127_p11 }
  0x30   : > { %p2123_p8 = pneg %p2122_p7 }
  0x32   : > { %p2130_p6 = pnand %p2129_p5, %p2123_p8 }
  0x34   : > { %2133 = shalt.err (!%p2130_p6)
}
  0x35   : > { %1951 = dma.hbm_to_vmem [thread:$0]  (!%p2328_p12), %s2620_s5, 256, %s270_s24, [#allocation6], %s2207_s26, %s2207_s26, %s2208_s10  }
  0x36   : > { %298 = sbr.rel (%p2320_p10) target bundleno = 2287 (0x8ef), region = 52  ;;  %p2630_p9 = scmp.eq.s32.totalorder (!%p2320_p10), %s2292_s9, 0 }
  0x3b   : > { %2177 = dma.done.wait (%p2630_p9), [#allocation3], 128   ;;  %p2631_p13 = pmov %p2630_p9 }
  0x3c   : > { %p2632_p1 = pmov %p2630_p9 }
  0x3d   : > { %2179 = vsyncadd (%p2631_p13), [#allocation3], 4294967168 }
  0x3e   : > { %2181 = dma.done.wait (%p2632_p1), [#allocation6], 512   ;;  %p2633_p5 = pmov %p2632_p1 }
  0x3f   : > { %p339_p3 = scmp.lt.s32.totalorder %s2292_s9, 1  ;;  %vm346_vm0 = vcmask 261120   ;;  %v2016_v7 = vld [vmem:[%s2618_s3 + $0x8] sm:$0xff]   ;;  %v2209_v8 = vmov 0.0   ;;  %vm2210_vm1 = vmmov 0   ;;  %v2017_v9 = vld [vmem:[%s2618_s3] sm:$0xff]   ;;  %v361_v13 = vlaneseq }
  0x40   : > { %2183 = vsyncadd (%p2633_p5), [#allocation6], 4294966784  ;;  %1828 = vmatprep.subr.bf16.mxu1 %v2209_v8  ;;  %1832 = vmatprep.mubr.msk.bf16.mxu1 %vm2210_vm1, %v2209_v8  ;;  %v2396_v16 = vld [vmem:[#allocation2] sm:$0xff]  ;;  %s2211_s23 = smov 104   ;;  %s2212_s19 = smov 120   ;;  %vm792_vm2 = vcmask 64512  }
  0x41   : > { %s340_s20 = scalar_select %p339_p3, %s2292_s9, 1  ;;  %1829 = vmatpush3.bf16.msra.mxu1 %v2016_v7  ;;  %1842 = vmatprep.subr.bf16.mxu0 %v2209_v8  ;;  %v2393_v14 = vshrl.u32 %v361_v13, 7  ;;  %v2222_v34 = vmov 1983009808   ;;  %v2223_v41 = vmov 1934713408  }
  0x42   : > { %1830 = vmatprep.subr.bf16.mxu1 %v2209_v8  ;;  %1844 = vmatprep.mubr.msk.bf16.mxu0 %vm2210_vm1, %v2209_v8  ;;  %s2213_s25 = smov 48   ;;  %s2214_s12 = smov 112   ;;  %v464_v35 = vunpack.c.l.s4 %v2222_v34  ;;  %v497_v42 = vunpack.c.l.s4 %v2223_v41  ;;  %vm1040_vm3 = vcmask 1043456   ;;  %vm1594_vm5 = vcmask 523264  }
  0x43   : > { %s1755_s22 = sshll.u32 %s340_s20, 3  ;;  %v363_v15 = vsub.s32 0, %v2393_v14  ;;  %v368_v17 = vsub.s32 1, %v2393_v14  ;;  %s2215_s20 = smov 96  }
  0x44   : > { %s342_s26 = scalar_lea.vmem %s2615_s0, %s1755_s22  ;;  %s2216_s22 = smov 88   ;;  %v465_v38 = vunpack.c.0.s8 %v464_v35  ;;  %v498_v49 = vunpack.c.0.s8 %v497_v42 }
  0x45   : > { %v2373_v0 = vld [vmem:[%s342_s26] sm:$0xff]  ;;  %1831 = vmatpush3.bf16.msra.mxu1 %v2017_v9  ;;  %v364_v18 = vrot.slane %v2396_v16, %v363_v15  ;;  %v369_v21 = vrot.slane %v2396_v16, %v368_v17  ;;  %s2217_s24 = smov 80   ;;  %s2218_s17 = smov 72  }
  0x46   : > { %v347_v1 = vsel %vm346_vm0, %v2373_v0, 0.0  ;;  %1836 = vmatprep.subr.bf16.mxu1 %v2209_v8  ;;  %s2219_s26 = smov 64   ;;  %s2220_s10 = smov 56   ;;  %v2405_v40 = vsub.s32 %v465_v38, %v2393_v14  ;;  %v2413_v58 = vsub.s32 %v498_v49, %v2393_v14 }
  0x47   : > { %348 = vadd.xlane.f32.xlu0 %v347_v1  ;;  %s2221_s13 = smov 40   ;;  %s336_s21 = sand.u32 1, %s2194_s28  }
  0x48   : > { %p2634_p12 = scmp.ne.s32.totalorder %s2626_s15, 0 }
  0xd0   : > { %v349_v2 = vpop.xlane.xlu0 %348 }
  0xd1   : > { %v351_v3 = vmul.f32 0.03125, %v349_v2 }
  0xd3   : > { %v352_v4 = vsub.f32 %v2373_v0, %v351_v3 }
  0xd5   : > { %v353_v5 = vmul.f32 %v352_v4, %v352_v4 }
  0xd7   : > { %v354_v6 = vsel %vm346_vm0, %v353_v5, 0.0 }
  0xd8   : > { %355 = vadd.xlane.f32.xlu0 %v354_v6 }
 0x161   : > { %v356_v10 = vpop.xlane.xlu0 %355 }
 0x162   : > { %v357_v11 = vmul.f32 0.03125, %v356_v10 }
 0x164   : > { %v358_v12 = vadd.f32 1e-05, %v357_v11 }
 0x166   : > { %2024 = vrsqrt.f32 %v358_v12 }
 0x173   : > { %v2025_v19 = vpop.eup %2024 }
 0x174   : > { %v360_v20 = vmul.f32 %v2025_v19, %v352_v4 }
 0x176   : > { %v365_v22 = vmul.f32 %v364_v18, %v360_v20 }
 0x178   : > { %v370_v23 = vadd.f32 %v369_v21, %v365_v22 }
 0x17a   : > { %v371_v24 = vpack.c.bf16 %v370_v23, %v370_v23 }
 0x17c   : > { %1833 = vmatmul.mubr.msk.bf16.vlgmr.msra.gmra.mxu1 %vm346_vm0, %v371_v24 }
 0x17d   : > { %1838 = vmatprep.mubr.msk.bf16.mxu1 %vm2210_vm1, %v2209_v8 }
 0x23c   : > { %v425_v25 = vpop.f32.mrf.mxu1 }
 0x23d   : > { %v431_v26 = vpack.c.bf16 %v425_v25, %v425_v25 }
 0x23e   : > { %v1834_v27 = vpop.f32.mrf.mxu1 }
 0x23f   : > { %439 = vrot.lane.b32.xlu0 %v431_v26, %s2211_s23  ;;  %433 = vrot.lane.b32.xlu1 %v431_v26, %s2212_s19  ;;  %s1754_s23 = sshll.u32 %s336_s21, 3  ;;  %s1781_s19 = sshll.u32 %s2292_s9, 7 }
 0x240   : > { %v428_v28 = vpop.f32.mrf.mxu1  ;;  %s1641_s9 = scalar_lea.sflag [#allocation4], %s336_s21 }
 0x242   : > { %v1835_v29 = vpop.f32.mrf.mxu1 }
 0x243   : > { %458 = vrot.lane.b32.xlu0 %v431_v26, %s2213_s25  ;;  %436 = vrot.lane.b32.xlu1 %v431_v26, %s2214_s12  ;;  %s338_s25 = scalar_lea.vmem [#allocation8], %s1754_s23 }
 0x244   : > { %s1654_s12 = sshll.u32 %s338_s25, 4  ;;  %s2575_s12 = int_to_ptr.vmem [resolvable:$true] %s1654_s12 }
 0x247   : > { %442 = vrot.lane.b32.xlu1 %v431_v26, %s2215_s20 }
 0x24b   : > { %445 = vrot.lane.b32.xlu1 %v431_v26, %s2216_s22 }
 0x24f   : > { %448 = vrot.lane.b32.xlu1 %v431_v26, %s2217_s24  ;;  %s2573_s24 = scalar_lea.hbm %s2623_s8, %s1781_s19 }
 0x253   : > { %451 = vrot.lane.b32.xlu1 %v431_v26, %s2218_s17  ;;  %s2134_s17 = scalar_lea.vmem %s2575_s12, 128 }
 0x254   : > { %p2135_p10 = scmp.ne.s32.totalorder %s2575_s12, %s2134_s17 }
 0x256   : > { %p2136_p2 = pnand %p2135_p10, %p2634_p12 }
 0x257   : > { %454 = vrot.lane.b32.xlu1 %v431_v26, %s2219_s26  ;;  %s2225_s26 = smov [#allocation8]  }
 0x258   : > { %p2137_p4 = pneg %p2136_p2 }
 0x25b   : > { %456 = vrot.lane.b32.xlu1 %v431_v26, %s2220_s10  ;;  %s2138_s10 = sshll.u32 %s2225_s26, 4  ;;  %s2139_s10 = int_to_ptr.vmem [resolvable:$false] %s2138_s10 }
 0x25c   : > { %p2141_p7 = scmp.lt.s32.totalorder %s2575_s12, %s2139_s10 }
 0x25f   : > { %460 = vrot.lane.b32.xlu1 %v431_v26, %s2221_s13  ;;  %s2140_s13 = scalar_lea.vmem %s2139_s10, 256 }
 0x260   : > { %p2142_p8 = scmp.lt.s32.totalorder %s2140_s13, %s2134_s17 }
 0x262   : > { %p2143_p11 = por %p2142_p8, %p2141_p7 }
 0x264   : > { %p2144_p0 = pnand %p2143_p11, %p2137_p4 }
 0x2b1   : > { %v434_v30 = vpop.permute.xlu1 %433  ;;  %v440_v37 = vpop.permute.xlu0 %439 }
 0x2b5   : > { %v437_v31 = vpop.permute.xlu1 %436  ;;  %v459_v44 = vpop.permute.xlu0 %458 }
 0x2b6   : > { %v493_v50 = vrot.slane %v459_v44, %v2405_v40 }
 0x2b9   : > { %v443_v32 = vpop.permute.xlu1 %442 }
 0x2ba   : > { %v462_v46 = vcombine.low %v431_v26, %v443_v32 }
 0x2bc   : > { %v469_v54 = vrot.slane %v462_v46, %v2405_v40 }
 0x2bd   : > { %v446_v33 = vpop.permute.xlu1 %445 }
 0x2be   : > { %v530_v52 = vcombine.low %v434_v30, %v446_v33 }
 0x2c0   : > { %v537_v61 = vrot.slane %v530_v52, %v2405_v40 }
 0x2c1   : > { %v449_v36 = vpop.permute.xlu1 %448 }
 0x2c2   : > { %v470_v43 = vcombine.low %v437_v31, %v449_v36 }
 0x2c4   : > { %v477_v51 = vrot.slane %v470_v43, %v2405_v40 }
 0x2c5   : > { %v452_v39 = vpop.permute.xlu1 %451 }
 0x2c6   : > { %v538_v48 = vcombine.low %v440_v37, %v452_v39  ;;  %v494_v59 = vcombine.low %v469_v54, %v477_v51  ;;  %v495_v60 = vcombine.high %v469_v54, %v477_v51 }
 0x2c8   : > { %v545_v57 = vrot.slane %v538_v48, %v2405_v40  ;;  %v502_v6 = vrot.slane %v494_v59, %v2413_v58  ;;  %v509_v7 = vrot.slane %v495_v60, %v2413_v58 }
 0x2c9   : > { %v455_v45 = vpop.permute.xlu1 %454 }
 0x2ca   : > { %v485_v47 = vrot.slane %v455_v45, %v2405_v40  ;;  %v562_v2 = vcombine.low %v537_v61, %v545_v57  ;;  %v563_v3 = vcombine.high %v537_v61, %v545_v57 }
 0x2cc   : > { %v510_v55 = vcombine.low %v485_v47, %v493_v50  ;;  %v511_v56 = vcombine.high %v485_v47, %v493_v50  ;;  %v570_v17 = vrot.slane %v562_v2, %v2413_v58  ;;  %v577_v18 = vrot.slane %v563_v3, %v2413_v58 }
 0x2cd   : > { %v457_v53 = vpop.permute.xlu1 %456 }
 0x2ce   : > { %v518_v63 = vrot.slane %v510_v55, %v2413_v58  ;;  %v525_v1 = vrot.slane %v511_v56, %v2413_v58  ;;  %v553_v4 = vrot.slane %v457_v53, %v2405_v40 }
 0x2d0   : > { %v526_v11 = vcombine.low %v502_v6, %v518_v63  ;;  %v527_v12 = vcombine.high %v502_v6, %v518_v63  ;;  %v528_v13 = vcombine.low %v509_v7, %v525_v1  ;;  %v529_v15 = vcombine.high %v509_v7, %v525_v1 }
 0x2d1   : > { %v461_v62 = vpop.permute.xlu1 %460  ;;  %v2224_v7 = vmov 0  }
 0x2d2   : > { %v561_v5 = vrot.slane %v461_v62, %v2405_v40  ;;  %v602_v25 = vshrl.u32 %v526_v11, 16  ;;  %v610_v26 = vshrl.u32 %v527_v12, 16  ;;  %v618_v27 = vshrl.u32 %v528_v13, 16 }
 0x2d3   : > { %v626_v28 = vshrl.u32 %v529_v15, 16 }
 0x2d4   : > { %v578_v9 = vcombine.low %v553_v4, %v561_v5  ;;  %v579_v10 = vcombine.high %v553_v4, %v561_v5 }
 0x2d6   : > { %v586_v19 = vrot.slane %v578_v9, %v2413_v58  ;;  %v593_v20 = vrot.slane %v579_v10, %v2413_v58 }
 0x2d8   : > { %v594_v21 = vcombine.low %v570_v17, %v586_v19  ;;  %v595_v22 = vcombine.high %v570_v17, %v586_v19  ;;  %v596_v23 = vcombine.low %v577_v18, %v593_v20  ;;  %v597_v24 = vcombine.high %v577_v18, %v593_v20 }
 0x2da   : > { %v600_v29 = vpack.i.b16 %v594_v21, %v526_v11  ;;  %v603_v30 = vshrl.u32 %v594_v21, 16  ;;  %v608_v31 = vpack.i.b16 %v595_v22, %v527_v12  ;;  %v611_v32 = vshrl.u32 %v595_v22, 16 }
 0x2db   : > { %v616_v33 = vpack.i.b16 %v596_v23, %v528_v13  ;;  %v619_v34 = vshrl.u32 %v596_v23, 16  ;;  %v624_v35 = vpack.i.b16 %v597_v24, %v529_v15  ;;  %v627_v36 = vshrl.u32 %v597_v24, 16 }
 0x2dc   : > { %v604_v37 = vpack.i.b16 %v603_v30, %v602_v25  ;;  %v612_v38 = vpack.i.b16 %v611_v32, %v610_v26 }
 0x2dd   : > { %v620_v39 = vpack.i.b16 %v619_v34, %v618_v27  ;;  %v628_v41 = vpack.i.b16 %v627_v36, %v626_v28  ;;  %v630_v42 = vcombine.low %v600_v29, %v616_v33  ;;  %v631_v43 = vcombine.high %v600_v29, %v616_v33 }
 0x2de   : > { %v646_v44 = vcombine.low %v608_v31, %v624_v35  ;;  %v647_v45 = vcombine.high %v608_v31, %v624_v35 }
 0x2df   : > { %v638_v46 = vrot.slane %v630_v42, %v2405_v40  ;;  %v689_v47 = vcombine.low %v604_v37, %v620_v39  ;;  %v690_v48 = vcombine.high %v604_v37, %v620_v39  ;;  %v705_v50 = vcombine.low %v612_v38, %v628_v41 }
 0x2e0   : > { %v654_v49 = vrot.slane %v646_v44, %v2405_v40  ;;  %v706_v51 = vcombine.high %v612_v38, %v628_v41  ;;  %v645_v52 = vrot.slane %v631_v43, %v2405_v40  ;;  %v661_v53 = vrot.slane %v647_v45, %v2405_v40 }
 0x2e1   : > { %v697_v54 = vrot.slane %v689_v47, %v2405_v40  ;;  %v704_v55 = vrot.slane %v690_v48, %v2405_v40  ;;  %v713_v57 = vrot.slane %v705_v50, %v2405_v40  ;;  %v1785_v47 = vld [vmem:[%s2616_s1] sm:$0xff]  }
 0x2e2   : > { %v663_v56 = vcombine.high %v638_v46, %v654_v49  ;;  %v720_v59 = vrot.slane %v706_v51, %v2405_v40  ;;  %v678_v62 = vcombine.low %v645_v52, %v661_v53  ;;  %v662_v3 = vcombine.low %v638_v46, %v654_v49 }
 0x2e3   : > { %v722_v61 = vcombine.high %v697_v54, %v713_v57  ;;  %v721_v1 = vcombine.low %v697_v54, %v713_v57  ;;  %v1786_v48 = vunpack.c.l.bf16 %v1785_v47  ;;  %v1787_v49 = vunpack.c.h.bf16 %v1785_v47  ;;  %v1792_v54 = vld [vmem:[%s2616_s1 + $0x8] sm:$0xff]  }
 0x2e4   : > { %v677_v60 = vrot.slane %v663_v56, %v2413_v58  ;;  %v737_v63 = vcombine.low %v704_v55, %v720_v59  ;;  %v685_v10 = vrot.slane %v678_v62, %v2413_v58  ;;  %v670_v18 = vrot.slane %v662_v3, %v2413_v58 }
 0x2e5   : > { %v736_v2 = vrot.slane %v722_v61, %v2413_v58  ;;  %v729_v13 = vrot.slane %v721_v1, %v2413_v58  ;;  %v1790_v61 = vunpack.c.l.bf16 %v1792_v54  ;;  %v1791_v1 = vunpack.c.h.bf16 %v1792_v54 }
 0x2e6   : > { %v763_v5 = vshrl.u32 %v677_v60, 16  ;;  %v744_v11 = vrot.slane %v737_v63, %v2413_v58  ;;  %v687_v15 = vcombine.high %v677_v60, %v2224_v7  ;;  %v2443_v20 = vcombine.high %v685_v10, %v2224_v7 }
 0x2e7   : > { %v762_v4 = vpack.i.b16 %v736_v2, %v677_v60  ;;  %v764_v6 = vshrl.u32 %v736_v2, 16  ;;  %v746_v9 = vcombine.high %v736_v2, %v2224_v7  ;;  %v752_v23 = vshrl.u32 %v729_v13, 16 }
 0x2e8   : > { %v2445_v21 = vcombine.high %v744_v11, %v2224_v7  ;;  %v769_v24 = vshrl.u32 %v687_v15, 16  ;;  %v781_v26 = vshrl.u32 %v2443_v20, 16  ;;  %v750_v27 = vpack.i.b16 %v729_v13, %v670_v18 }
 0x2e9   : > { %v797_v40 = vsel %vm792_vm2, %v762_v4, 0  ;;  %v765_v12 = vpack.i.b16 %v764_v6, %v763_v5  ;;  %v770_v19 = vshrl.u32 %v746_v9, 16  ;;  %v768_v22 = vpack.i.b16 %v746_v9, %v687_v15 }
 0x2ea   : > { %1837 = vmatpush3.bf16.xpose.msra.mxu1 %v797_v40  ;;  %v780_v25 = vpack.i.b16 %v2445_v21, %v2443_v20  ;;  %v782_v58 = vshrl.u32 %v2445_v21, 16  ;;  %v751_v28 = vshrl.u32 %v670_v18, 16  ;;  %v745_v33 = vcombine.high %v729_v13, %v2224_v7 }
 0x2eb   : > { %v843_v17 = vsel %vm792_vm2, %v765_v12, 0  ;;  %1848 = vmatprep.subr.bf16.mxu1 %v2209_v8  ;;  %v771_v29 = vpack.i.b16 %v770_v19, %v769_v24  ;;  %v889_v31 = vsel %vm792_vm2, %v768_v22, 0  ;;  %v686_v35 = vcombine.high %v670_v18, %v2224_v7 }
 0x2ec   : > { %1843 = vmatpush3.bf16.xpose.msra.mxu0 %v843_v17  ;;  %v2452_v30 = vpack.i.b16 %v782_v58, %v781_v26  ;;  %v753_v32 = vpack.i.b16 %v752_v23, %v751_v28  ;;  %v776_v36 = vshrl.u32 %v744_v11, 16  ;;  %v774_v37 = vpack.i.b16 %v744_v11, %v685_v10 }
 0x2ed   : > { %1854 = vmatprep.subr.bf16.mxu0 %v2209_v8  ;;  %v935_v34 = vsel %vm792_vm2, %v771_v29, 0  ;;  %v758_v38 = vshrl.u32 %v745_v33, 16  ;;  %v775_v39 = vshrl.u32 %v685_v10, 16  ;;  %v756_v41 = vpack.i.b16 %v745_v33, %v686_v35 }
 0x2ee   : > { %v757_v42 = vshrl.u32 %v686_v35, 16  ;;  %v1042_v44 = vsel %vm1040_vm3, %v774_v37, 0 }
 0x2ef   : > { %v777_v43 = vpack.i.b16 %v776_v36, %v775_v39  ;;  %v1134_v36 = vsel %vm1040_vm3, %v780_v25, 0  ;;  %v1180_v39 = vsel %vm1040_vm3, %v2452_v30, 0 }
 0x2f0   : > { %v759_v45 = vpack.i.b16 %v758_v38, %v757_v42 }
 0x2f1   : > { %1839 = vmatmul.mubr.msk.bf16.vlgmr.msra.gmra.mxu1 %vm792_vm2, %v750_v27  ;;  %v1088_v46 = vsel %vm1040_vm3, %v777_v43, 0  ;;  %v1234_v43 = vld [vmem:[#allocation5] sm:$0xf] }
 0x2f2   : > { %1849 = vmatpush3.bf16.xpose.msra.mxu1 %v889_v31  ;;  %1850 = vmatprep.mubr.msk.bf16.mxu1 %vm2210_vm1, %v2209_v8 }
 0x2f3   : > { %1845 = vmatmul.mubr.msk.bf16.vlgmr.msra.gmra.mxu0 %vm792_vm2, %v753_v32  ;;  %1860 = vmatprep.subr.bf16.mxu1 %v2209_v8 }
 0x2f4   : > { %1855 = vmatpush3.bf16.xpose.msra.mxu0 %v935_v34  ;;  %1856 = vmatprep.mubr.msk.bf16.mxu0 %vm2210_vm1, %v2209_v8 }
 0x2f5   : > { %1866 = vmatprep.subr.bf16.mxu0 %v2209_v8 }
 0x2f9   : > { %1851 = vmatmul.mubr.msk.bf16.vlgmr.msra.gmra.mxu1 %vm792_vm2, %v756_v41 }
 0x2fa   : > { %1861 = vmatpush3.bf16.msra.mxu1 %v1042_v44  ;;  %1862 = vmatprep.mubr.msk.bf16.mxu1 %vm2210_vm1, %v2209_v8  ;;  %v1235_v44 = vld [vmem:[#allocation5 + $0x4] sm:$0xf] }
 0x2fb   : > { %1857 = vmatmul.mubr.msk.bf16.vlgmr.msra.gmra.mxu0 %vm792_vm2, %v759_v45  ;;  %1872 = vmatprep.subr.bf16.mxu1 %v2209_v8  ;;  %v1246_v45 = vsel %vm1040_vm3, %v1234_v43, 0 }
 0x2fc   : > { %1867 = vmatpush3.bf16.msra.mxu0 %v1088_v46  ;;  %1868 = vmatprep.mubr.msk.bf16.mxu0 %vm2210_vm1, %v2209_v8  ;;  %v1292_v46 = vsel %vm1040_vm3, %v1235_v44, 0 }
 0x2fd   : > { %1878 = vmatprep.subr.bf16.mxu0 %v2209_v8 }
 0x3b1   : > { %v833_v50 = vpop.f32.mrf.mxu1 }
 0x3b2   : > { %v834_v51 = vadd.f32 %v1786_v48, %v833_v50 }
 0x3b3   : > { %v1840_v52 = vpop.f32.mrf.mxu1  ;;  %v879_v53 = vpop.f32.mrf.mxu0 }
 0x3b4   : > { %v880_v55 = vadd.f32 %v1787_v49, %v879_v53  ;;  %v977_v56 = vsel %vm792_vm2, %v834_v51, -inf }
 0x3b5   : > { %v1846_v57 = vpop.f32.mrf.mxu0  ;;  %978 = vmax.xlane.f32.xlu0 %v977_v56  ;;  %v836_v59 = vpop.f32.mrf.mxu1 }
 0x3b6   : > { %v980_v60 = vsel %vm792_vm2, %v880_v55, -inf }
 0x3b7   : > { %981 = vmax.xlane.f32.xlu1 %v980_v60  ;;  %v1841_v62 = vpop.f32.mrf.mxu1  ;;  %v882_v63 = vpop.f32.mrf.mxu0 }
 0x3b9   : > { %v1847_v2 = vpop.f32.mrf.mxu0  ;;  %v925_v3 = vpop.f32.mrf.mxu1 }
 0x3ba   : > { %v926_v4 = vadd.f32 %v1790_v61, %v925_v3 }
 0x3bb   : > { %v1852_v5 = vpop.f32.mrf.mxu1  ;;  %v971_v6 = vpop.f32.mrf.mxu0 }
 0x3bc   : > { %v972_v7 = vadd.f32 %v1791_v1, %v971_v6  ;;  %v983_v9 = vsel %vm792_vm2, %v926_v4, -inf }
 0x3bd   : > { %v1858_v10 = vpop.f32.mrf.mxu0  ;;  %984 = vmax.xlane.f32.xlu0 %v983_v9  ;;  %v928_v11 = vpop.f32.mrf.mxu1 }
 0x3be   : > { %v986_v13 = vsel %vm792_vm2, %v972_v7, -inf }
 0x3bf   : > { %v1853_v40 = vpop.f32.mrf.mxu1  ;;  %v974_v12 = vpop.f32.mrf.mxu0 }
 0x3c1   : > { %v1859_v15 = vpop.f32.mrf.mxu0  ;;  %987 = vmax.xlane.f32.xlu0 %v986_v13 }
 0x3c2   : > { %v1236_v15 = vld [vmem:[#allocation5 + $0x8] sm:$0xf] }
 0x43e   : > { %v979_v17 = vpop.xlane.xlu0 %978 }
 0x43f   : > { %v1001_v18 = vsub.f32 %v834_v51, %v979_v17  ;;  %v989_v47 = vsub.f32 -inf, %v979_v17 }
 0x440   : > { %v982_v19 = vpop.xlane.xlu1 %981 }
 0x441   : > { %v1005_v22 = vmul.f32 1.442695, %v1001_v18  ;;  %v1002_v23 = vsub.f32 %v880_v55, %v982_v19  ;;  %v990_v48 = vsub.f32 -inf, %v982_v19  ;;  %v993_v49 = vmul.f32 1.442695, %v989_v47 }
 0x443   : > { %v1007_v24 = vmul.f32 1.442695, %v1002_v23  ;;  %2026 = vpow2.f32 %v1005_v22  ;;  %v995_v50 = vmul.f32 1.442695, %v990_v48 }
 0x445   : > { %2028 = vpow2.f32 %v1007_v24  ;;  %v1237_v24 = vld [vmem:[#allocation5 + $0xc] sm:$0xf] }
 0x446   : > { %v985_v26 = vpop.xlane.xlu0 %984 }
 0x447   : > { %v1003_v58 = vsub.f32 %v926_v4, %v985_v26  ;;  %v991_v51 = vsub.f32 -inf, %v985_v26 }
 0x449   : > { %v1009_v27 = vmul.f32 1.442695, %v1003_v58  ;;  %v997_v52 = vmul.f32 1.442695, %v991_v51 }
 0x44a   : > { %v988_v28 = vpop.xlane.xlu0 %987 }
 0x44b   : > { %v1004_v29 = vsub.f32 %v972_v7, %v988_v28  ;;  %2030 = vpow2.f32 %v1009_v27  ;;  %v992_v53 = vsub.f32 -inf, %v988_v28  ;;  %v1338_v27 = vsel %vm1040_vm3, %v1236_v15, 0 }
 0x44d   : > { %v1011_v31 = vmul.f32 1.442695, %v1004_v29  ;;  %v999_v54 = vmul.f32 1.442695, %v992_v53 }
 0x44f   : > { %2032 = vpow2.f32 %v1011_v31 }
 0x450   : > { %v2027_v32 = vpop.eup %2026  ;;  %2034 = vpow2.f32 %v993_v49 }
 0x451   : > { %v1017_v33 = vsel %vm792_vm2, %v2027_v32, 0.0  ;;  %v1033_v34 = vpack.c.bf16 %v2027_v32, %v2027_v32  ;;  %2036 = vpow2.f32 %v995_v50  ;;  %v1384_v32 = vsel %vm1040_vm3, %v1237_v24, 0 }
 0x452   : > { %v2029_v35 = vpop.eup %2028  ;;  %1018 = vadd.xlane.f32.xlu1 %v1017_v33  ;;  %2038 = vpow2.f32 %v997_v52 }
 0x453   : > { %1863 = vmatmul.mubr.msk.bf16.vlgmr.msra.gmra.mxu1 %vm792_vm2, %v1033_v34  ;;  %v1020_v37 = vsel %vm792_vm2, %v2029_v35, 0.0  ;;  %v1034_v38 = vpack.c.bf16 %v2029_v35, %v2029_v35  ;;  %2040 = vpow2.f32 %v999_v54 }
 0x454   : > { %1873 = vmatpush3.bf16.msra.mxu1 %v1134_v36  ;;  %1021 = vadd.xlane.f32.xlu0 %v1020_v37 }
 0x455   : > { %1869 = vmatmul.mubr.msk.bf16.vlgmr.msra.gmra.mxu0 %vm792_vm2, %v1034_v38  ;;  %1874 = vmatprep.mubr.msk.bf16.mxu1 %vm2210_vm1, %v2209_v8 }
 0x456   : > { %1879 = vmatpush3.bf16.msra.mxu0 %v1180_v39  ;;  %1880 = vmatprep.mubr.msk.bf16.mxu0 %vm2210_vm1, %v2209_v8 }
 0x457   : > { %1884 = vmatprep.subr.bf16.mxu1 %v2209_v8  ;;  %1890 = vmatprep.subr.bf16.mxu0 %v2209_v8 }
 0x458   : > { %v2031_v20 = vpop.eup %2030 }
 0x459   : > { %v1023_v21 = vsel %vm792_vm2, %v2031_v20, 0.0  ;;  %v1035_v25 = vpack.c.bf16 %v2031_v20, %v2031_v20 }
 0x45a   : > { %1024 = vadd.xlane.f32.xlu1 %v1023_v21 }
 0x45b   : > { %1875 = vmatmul.mubr.msk.bf16.vlgmr.msra.gmra.mxu1 %vm792_vm2, %v1035_v25 }
 0x45c   : > { %v2033_v41 = vpop.eup %2032  ;;  %1886 = vmatprep.mubr.msk.bf16.mxu1 %vm2210_vm1, %v2209_v8  ;;  %1885 = vmatpush3.bf16.msra.mxu1 %v1246_v45 }
 0x45d   : > { %v1026_v30 = vsel %vm792_vm2, %v2033_v41, 0.0  ;;  %v1036_v42 = vpack.c.bf16 %v2033_v41, %v2033_v41  ;;  %1896 = vmatprep.subr.bf16.mxu1 %v2209_v8  ;;  %v2035_v55 = vpop.eup %2034 }
 0x45e   : > { %1027 = vadd.xlane.f32.xlu0 %v1026_v30  ;;  %v2037_v56 = vpop.eup %2036  ;;  %v1013_v59 = vmul.f32 0.0, %v2035_v55 }
 0x45f   : > { %1881 = vmatmul.mubr.msk.bf16.vlgmr.msra.gmra.mxu0 %vm792_vm2, %v1036_v42  ;;  %v1014_v62 = vmul.f32 0.0, %v2037_v56  ;;  %v2039_v1 = vpop.eup %2038 }
 0x460   : > { %1892 = vmatprep.mubr.msk.bf16.mxu0 %vm2210_vm1, %v2209_v8  ;;  %1891 = vmatpush3.bf16.msra.mxu0 %v1292_v46  ;;  %v1015_v3 = vmul.f32 0.0, %v2039_v1  ;;  %v2041_v4 = vpop.eup %2040 }
 0x461   : > { %1902 = vmatprep.subr.bf16.mxu0 %v2209_v8  ;;  %v1016_v7 = vmul.f32 0.0, %v2041_v4 }
 0x4db   : > { %v1019_v57 = vpop.xlane.xlu1 %1018 }
 0x4dc   : > { %v1029_v61 = vadd.f32 %v1019_v57, %v1013_v59 }
 0x4dd   : > { %v1022_v60 = vpop.xlane.xlu0 %1021 }
 0x4de   : > { %v1030_v63 = vadd.f32 %v1022_v60, %v1014_v62  ;;  %2042 = vrcp.f32 %v1029_v61 }
 0x4e0   : > { %2044 = vrcp.f32 %v1030_v63 }
 0x4e3   : > { %v1025_v2 = vpop.xlane.xlu1 %1024 }
 0x4e4   : > { %v1031_v5 = vadd.f32 %v1025_v2, %v1015_v3 }
 0x4e6   : > { %2046 = vrcp.f32 %v1031_v5 }
 0x4e7   : > { %v1028_v6 = vpop.xlane.xlu0 %1027 }
 0x4e8   : > { %v1032_v9 = vadd.f32 %v1028_v6, %v1016_v7 }
 0x4ea   : > { %2048 = vrcp.f32 %v1032_v9 }
 0x4eb   : > { %v2043_v40 = vpop.eup %2042 }
 0x4ed   : > { %v2045_v19 = vpop.eup %2044 }
 0x4f3   : > { %v2047_v36 = vpop.eup %2046 }
 0x4f7   : > { %v2049_v41 = vpop.eup %2048 }
 0x513   : > { %v1078_v10 = vpop.f32.mrf.mxu1 }
 0x514   : > { %v1222_v11 = vadd.f32 %v1078_v10, %v1013_v59 }
 0x515   : > { %v1864_v12 = vpop.f32.mrf.mxu1  ;;  %v1124_v13 = vpop.f32.mrf.mxu0 }
 0x516   : > { %v1230_v17 = vmul.f32 %v2043_v40, %v1222_v11  ;;  %v1223_v18 = vadd.f32 %v1124_v13, %v1014_v62  ;;  %v1437_v62 = vsub.s32 2, %v2393_v14 }
 0x517   : > { %v1081_v22 = vpop.f32.mrf.mxu1  ;;  %v1870_v23 = vpop.f32.mrf.mxu0 }
 0x518   : > { %v1238_v26 = vpack.c.bf16 %v1230_v17, %v1230_v17  ;;  %v1231_v58 = vmul.f32 %v2045_v19, %v1223_v18  ;;  %v2018_v22 = vld [vmem:[#allocation7 + $0x8] sm:$0xff]   ;;  %v2019_v23 = vld [vmem:[#allocation7] sm:$0xff]  }
 0x519   : > { %v1865_v28 = vpop.f32.mrf.mxu1  ;;  %v1127_v29 = vpop.f32.mrf.mxu0 }
 0x51a   : > { %v1239_v31 = vpack.c.bf16 %v1231_v58, %v1231_v58  ;;  %1887 = vmatmul.mubr.msk.bf16.vlgmr.msra.gmra.mxu1 %vm792_vm2, %v1238_v26  ;;  %v1455_v58 = vsub.s32 3, %v2393_v14 }
 0x51b   : > { %v1871_v33 = vpop.f32.mrf.mxu0  ;;  %v1170_v34 = vpop.f32.mrf.mxu1  ;;  %1897 = vmatpush3.bf16.msra.mxu1 %v1338_v27  ;;  %1898 = vmatprep.mubr.msk.bf16.mxu1 %vm2210_vm1, %v2209_v8  ;;  %v1460_v27 = vsub.s32 4, %v2393_v14 }
 0x51c   : > { %v1224_v35 = vadd.f32 %v1170_v34, %v1015_v3  ;;  %1893 = vmatmul.mubr.msk.bf16.vlgmr.msra.gmra.mxu0 %vm792_vm2, %v1239_v31  ;;  %1908 = vmatprep.subr.bf16.mxu1 %v2209_v8  ;;  %v1456_v28 = vrot.slane %v2396_v16, %v1455_v58 }
 0x51d   : > { %v1876_v37 = vpop.f32.mrf.mxu1  ;;  %1903 = vmatpush3.bf16.msra.mxu0 %v1384_v32  ;;  %1904 = vmatprep.mubr.msk.bf16.mxu0 %vm2210_vm1, %v2209_v8  ;;  %v1461_v32 = vrot.slane %v2396_v16, %v1460_v27 }
 0x51e   : > { %v1232_v38 = vmul.f32 %v2047_v36, %v1224_v35  ;;  %1916 = vmatprep.subr.bf16.mxu0 %v2209_v8  ;;  %v2020_v36 = vld [vmem:[%s2622_s7 + $0x18] sm:$0xff]   ;;  %v2021_v37 = vld [vmem:[%s2622_s7 + $0x10] sm:$0xff]  }
 0x51f   : > { %v1173_v39 = vpop.f32.mrf.mxu1  ;;  %v1216_v20 = vpop.f32.mrf.mxu0 }
 0x520   : > { %v1240_v21 = vpack.c.bf16 %v1232_v38, %v1232_v38  ;;  %v1225_v25 = vadd.f32 %v1216_v20, %v1016_v7  ;;  %v1438_v7 = vrot.slane %v2396_v16, %v1437_v62  ;;  %v2022_v38 = vld [vmem:[%s2622_s7 + $0x8] sm:$0xff]   ;;  %v2023_v39 = vld [vmem:[%s2622_s7] sm:$0xff]  }
 0x521   : > { %v1877_v30 = vpop.f32.mrf.mxu1  ;;  %v1882_v42 = vpop.f32.mrf.mxu0  ;;  %v1771_v20 = vld [vmem:[%s2621_s6] ss:$0 sm:$0xff] }
 0x522   : > { %v1233_v43 = vmul.f32 %v2049_v41, %v1225_v25  ;;  %1899 = vmatmul.mubr.msk.bf16.vlgmr.msra.gmra.mxu1 %vm792_vm2, %v1240_v21 }
 0x523   : > { %v1219_v44 = vpop.f32.mrf.mxu0  ;;  %1912 = vmatprep.mubr.msk.bf16.mxu1 %vm2210_vm1, %v2209_v8  ;;  %1909 = vmatpush3.bf16.msra.mxu1 %v2018_v22 }
 0x524   : > { %v1241_v45 = vpack.c.bf16 %v1233_v43, %v1233_v43  ;;  %1910 = vmatprep.subr.bf16.mxu1 %v2209_v8 }
 0x525   : > { %v1883_v46 = vpop.f32.mrf.mxu0 }
 0x526   : > { %1905 = vmatmul.mubr.msk.bf16.vlgmr.msra.gmra.mxu0 %vm792_vm2, %v1241_v45 }
 0x527   : > { %1924 = vmatprep.mubr.msk.bf16.mxu0 %vm2210_vm1, %v2209_v8  ;;  %1911 = vmatpush3.bf16.msra.mxu1 %v2019_v23 }
 0x528   : > { %1917 = vmatpush3.bf16.msra.mxu0 %v2020_v36 }
 0x529   : > { %1918 = vmatprep.subr.bf16.mxu0 %v2209_v8 }
 0x52c   : > { %1919 = vmatpush3.bf16.msra.mxu0 %v2021_v37 }
 0x52d   : > { %1920 = vmatprep.subr.bf16.mxu0 %v2209_v8 }
 0x530   : > { %1921 = vmatpush3.bf16.msra.mxu0 %v2022_v38 }
 0x531   : > { %1922 = vmatprep.subr.bf16.mxu0 %v2209_v8 }
 0x534   : > { %1923 = vmatpush3.bf16.msra.mxu0 %v2023_v39 }
 0x5da   : > { %v1282_v47 = vpop.f32.mrf.mxu1 }
 0x5db   : > { %v1426_v57 = vsel %vm346_vm0, %v1282_v47, 0.0 }
 0x5dc   : > { %v1888_v48 = vpop.f32.mrf.mxu1  ;;  %v1328_v49 = vpop.f32.mrf.mxu0 }
 0x5dd   : > { %v1427_v54 = vsel %vm346_vm0, %v1328_v49, 0.0 }
 0x5de   : > { %v1285_v50 = vpop.f32.mrf.mxu1  ;;  %v1894_v51 = vpop.f32.mrf.mxu0  ;;  %v1428_v60 = vadd.f32 %v1427_v54, %v1426_v57 }
 0x5e0   : > { %v1889_v52 = vpop.f32.mrf.mxu1  ;;  %v1331_v53 = vpop.f32.mrf.mxu0 }
 0x5e2   : > { %v1895_v55 = vpop.f32.mrf.mxu0  ;;  %v1374_v56 = vpop.f32.mrf.mxu1 }
 0x5e3   : > { %v1429_v59 = vsel %vm346_vm0, %v1374_v56, 0.0 }
 0x5e4   : > { %v1900_v61 = vpop.f32.mrf.mxu1  ;;  %v1430_v63 = vadd.f32 %v1429_v59, %v1428_v60 }
 0x5e6   : > { %v1377_v1 = vpop.f32.mrf.mxu1  ;;  %v1420_v2 = vpop.f32.mrf.mxu0 }
 0x5e7   : > { %v1431_v3 = vsel %vm346_vm0, %v1420_v2, 0.0 }
 0x5e8   : > { %v1432_v4 = vadd.f32 %v1431_v3, %v1430_v63  ;;  %v1901_v5 = vpop.f32.mrf.mxu1  ;;  %v1906_v6 = vpop.f32.mrf.mxu0 }
 0x5e9   : > { %v1568_v6 = vsub.s32 5, %v2393_v14 }
 0x5ea   : > { %v1434_v9 = vadd.f32 %v1432_v4, %v2373_v0  ;;  %v1423_v10 = vpop.f32.mrf.mxu0 }
 0x5ec   : > { %v1907_v11 = vpop.f32.mrf.mxu0  ;;  %v2535_v40 = vadd.f32 %v1438_v7, %v1434_v9  ;;  %v1569_v7 = vrot.slane %v2396_v16, %v1568_v6 }
 0x5ee   : > { %v1440_v12 = vsel %vm346_vm0, %v2535_v40, 0.0 }
 0x5ef   : > { %1441 = vadd.xlane.f32.xlu1 %v1440_v12 }
 0x678   : > { %v1442_v13 = vpop.xlane.xlu1 %1441 }
 0x679   : > { %v1443_v15 = vmul.f32 0.03125, %v1442_v13 }
 0x67b   : > { %v1444_v17 = vsub.f32 %v2535_v40, %v1443_v15 }
 0x67d   : > { %v1445_v18 = vmul.f32 %v1444_v17, %v1444_v17 }
 0x67f   : > { %v1446_v19 = vsel %vm346_vm0, %v1445_v18, 0.0 }
 0x680   : > { %1447 = vadd.xlane.f32.xlu0 %v1446_v19 }
 0x709   : > { %v1448_v0 = vpop.xlane.xlu0 %1447 }
 0x70a   : > { %v1449_v24 = vmul.f32 0.03125, %v1448_v0 }
 0x70c   : > { %v1450_v26 = vadd.f32 1e-05, %v1449_v24 }
 0x70e   : > { %2050 = vrsqrt.f32 %v1450_v26 }
 0x71b   : > { %v2051_v29 = vpop.eup %2050 }
 0x71c   : > { %v1452_v31 = vmul.f32 %v2051_v29, %v1444_v17 }
 0x71e   : > { %v1457_v33 = vmul.f32 %v1456_v28, %v1452_v31 }
 0x720   : > { %v1462_v34 = vadd.f32 %v1461_v32, %v1457_v33 }
 0x722   : > { %v1463_v35 = vpack.c.bf16 %v1462_v34, %v1462_v34 }
 0x724   : > { %1913 = vmatmul.mubr.msk.bf16.vlgmr.msra.gmra.mxu1 %vm346_vm0, %v1463_v35 }
 0x7e4   : > { %v1524_v21 = vpop.f32.mrf.mxu1 }
 0x7e5   : > { %v1525_v25 = vadd.f32 %v1771_v20, %v1524_v21 }
 0x7e6   : > { %v1914_v41 = vpop.f32.mrf.mxu1 }
 0x7e7   : > { %v1531_v30 = vmul.f32 0.70710677, %v1525_v25  ;;  %v1530_v2 = vmul.f32 0.5, %v1525_v25 }
 0x7e8   : > { %v1527_v42 = vpop.f32.mrf.mxu1 }
 0x7e9   : > { %v1532_v43 = vand.u32 2147483647, %v1531_v30  ;;  %vm1552_vm4 = vcmp.ge.f32.partialorder %v1531_v30, 0.0 }
 0x7ea   : > { %v1915_v44 = vpop.f32.mrf.mxu1 }
 0x7eb   : > { %v1533_v45 = vmul.f32 0.3275911, %v1532_v43  ;;  %v1546_v47 = vmul.f32 %v1532_v43, %v1532_v43 }
 0x7ed   : > { %v1534_v46 = vadd.f32 1.0, %v1533_v45  ;;  %v1547_v48 = vsub.f32 0.0, %v1546_v47 }
 0x7ef   : > { %2052 = vrcp.f32 %v1534_v46  ;;  %v1548_v8 = vmul.f32 1.442695, %v1547_v48 }
 0x7f1   : > { %2054 = vpow2.f32 %v1548_v8 }
 0x7fc   : > { %v2053_v49 = vpop.eup %2052 }
 0x7fd   : > { %v1537_v50 = vmul.f32 1.0614054, %v2053_v49 }
 0x7fe   : > { %v2055_v60 = vpop.eup %2054 }
 0x7ff   : > { %v1538_v51 = vadd.f32 -1.4531521, %v1537_v50 }
 0x801   : > { %v1539_v52 = vmul.f32 %v2053_v49, %v1538_v51 }
 0x803   : > { %v1540_v53 = vadd.f32 1.4214138, %v1539_v52 }
 0x805   : > { %v1541_v54 = vmul.f32 %v2053_v49, %v1540_v53 }
 0x807   : > { %v1542_v55 = vadd.f32 -0.28449672, %v1541_v54 }
 0x809   : > { %v1543_v56 = vmul.f32 %v2053_v49, %v1542_v55 }
 0x80b   : > { %v1544_v57 = vadd.f32 0.2548296, %v1543_v56 }
 0x80d   : > { %v1545_v59 = vmul.f32 %v2053_v49, %v1544_v57 }
 0x80f   : > { %v1550_v61 = vmul.f32 %v2055_v60, %v1545_v59 }
 0x811   : > { %v1551_v62 = vsub.f32 1.0, %v1550_v61 }
 0x813   : > { %v1553_v63 = vsub.f32 0.0, %v1551_v62 }
 0x815   : > { %v1554_v1 = vsel %vm1552_vm4, %v1551_v62, %v1553_v63 }
 0x816   : > { %v1555_v3 = vadd.f32 1.0, %v1554_v1 }
 0x818   : > { %v1556_v4 = vmul.f32 %v1555_v3, %v1530_v2 }
 0x81a   : > { %v1557_v5 = vpack.c.bf16 %v1556_v4, %v1556_v4 }
 0x81c   : > { %1925 = vmatmul.mubr.msk.bf16.vlgmr.msra.gmra.mxu0 %vm1594_vm5, %v1557_v5 }
 0x8dc   : > { %v1632_v9 = vpop.f32.mrf.mxu0 }
 0x8dd   : > { %v1633_v10 = vadd.f32 %v1632_v9, %v1569_v7 }
 0x8de   : > { %v1926_v11 = vpop.f32.mrf.mxu0 }
 0x8df   : > { %v1638_v12 = vadd.f32 %v1633_v10, %v2535_v40 }
 0x8e0   : > { %v1635_v14 = vpop.f32.mrf.mxu0 }
 0x8e1   : > { %1639 = vst.msk [vmem:[%s338_s25] sm:$0xff] %vm346_vm0, %v1638_v12 }
 0x8e2   : > { %v1927_v16 = vpop.f32.mrf.mxu0 }
 0x8e3   : > { %2147 = shalt.err (!%p2144_p0)
}
 0x8e4   : > { %s2148_s18 = scalar_lea.hbm %s2573_s24, 128  ;;  %s2152_s19 = scalar_lea.hbm %s2623_s8, 256 }
 0x8e5   : > { %p2149_p6 = scmp.ne.s32.totalorder %s2573_s24, %s2148_s18  ;;  %p2153_p1 = scmp.lt.s32.totalorder %s2573_s24, %s2623_s8 }
 0x8e6   : > { %p2154_p5 = scmp.lt.s32.totalorder %s2152_s19, %s2148_s18 }
 0x8e7   : > { %p2150_p9 = pnand %p2149_p6, %p2634_p12 }
 0x8e8   : > { %p2155_p3 = por %p2154_p5, %p2153_p1 }
 0x8e9   : > { %p2151_p13 = pneg %p2150_p9 }
 0x8eb   : > { %p2156_p10 = pnand %p2155_p3, %p2151_p13 }
 0x8ed   : > { %2159 = shalt.err (!%p2156_p10)
}
 0x8ee   : > { %1940 = dma.vmem_to_hbm [thread:$0]  (%p2634_p12), %s2575_s12, 128, %s2573_s24, %s1641_s9  }
 0x8ef PF: > { %p1962_p2 = scmp.ge.s32.totalorder %s2202_s30, 2  ;;  %s1666_s22 = sand.u32 1, %s2190_s27  }
 0x8f0   : > { %p2635_p4 = scmp.ne.s32.totalorder %s2627_s16, 0  ;;  %s1667_s17 = scalar_lea.sflag [#allocation4], %s1666_s22 }
 0x8f2   : > { %p1953_p7 = pnand %p1962_p2, %p2635_p4 }
 0x8f4   : > { %p1954_p8 = pneg %p1953_p7 }
 0x8f6   : > { %2185 = dma.done.wait (%p1954_p8), %s1667_s17, 128  }
 0x8f7   : > { %2187 = vsyncadd (%p1954_p8), %s1667_s17, 4294967168  ;;  %p20_p11 = scmp.ge.s32.totalorder %s2296_s11, 4   ;;  %s2636_s27 = smov %s2194_s28 }
 0x8f8   : > { %s2637_s28 = smov %s2198_s29  ;;  %s2638_s29 = smov %s2307_s14 }
 0x8f9   : > { %s2639_s30 = smov %s2296_s11  ;;  %22 = sbr.rel (!%p20_p11) target bundleno = 5 (0x5), region = 100 }
 0x8fe   :  { %1672 = vsyncpa [#allocation3], 1 }
 0x8ff   :  { %1674 = vsyncpa [#allocation3 + $0x1], 1 }
 0x900   :  { %1675 = vsyncpa [#allocation6], 1 }
 0x901   :  { %1676 = vsyncpa [#allocation4], 1 }
 0x902   :  { %1678 = vsyncpa [#allocation4 + $0x1], 1 }

</bundles_post_ra>
